<compile_context>
chip_gen: v6e
topology: v6e:2x2x1
jax: 0.10.0
libtpu: 0.0.40
codegen_flags: <defaults>
</compile_context>

<pallas_src>
import jax
import jax.numpy as jnp
from jax.experimental import pallas as pl
from jax.experimental.pallas import tpu as pltpu

EPS = 1e-5
NEG_SLOPE = 0.1


def _bn_train(h, gamma, beta):
    # BatchNorm1d training mode: per-feature batch mean, biased variance,
    # eps=1e-5.  Single traversal of h: var = E[h^2] - mean^2.
    mean = jnp.mean(h, axis=0, keepdims=True)
    mean_sq = jnp.mean(h * h, axis=0, keepdims=True)
    var = mean_sq - mean * mean
    return gamma * (h - mean) * jax.lax.rsqrt(var + EPS) + beta


def _leaky_relu(h):
    return jnp.where(h > 0, h, NEG_SLOPE * h)


def _bn_lrelu_linear(h, gamma, beta, w_bf16, b):
    # BN + LeakyReLU in f32, then bf16 x bf16 matmul on the MXU with f32 acc.
    h = _leaky_relu(_bn_train(h, gamma, beta))
    return jnp.dot(h.astype(jnp.bfloat16), w_bf16,
                   preferred_element_type=jnp.float32) + b


def lof_kernel(x_ref,
               g1_ref, be1_ref, w1_ref, b1_ref,
               g2_ref, be2_ref, w2_ref, b2_ref,
               g3_ref, be3_ref, w3_ref, b3_ref,
               o_ref):
    h = x_ref[...]                                               # (N, 1024) f32
    h = _bn_lrelu_linear(h, g1_ref[...], be1_ref[...], w1_ref[...], b1_ref[...])
    h = _bn_lrelu_linear(h, g2_ref[...], be2_ref[...], w2_ref[...], b2_ref[...])
    h = _bn_lrelu_linear(h, g3_ref[...], be3_ref[...], w3_ref[...], b3_ref[...])
    o_ref[...] = h.astype(o_ref.dtype)


def lof_block_fc_bottleneck(x, params):
    """x: (N, 1024) float32. params: BN params (f32) + Linear W (bf16) / b (f32)."""
    n = x.shape[0]
    args = (
        x,
        params["g1"], params["be1"], params["w1"], params["b1"],
        params["g2"], params["be2"], params["w2"], params["b2"],
        params["g3"], params["be3"], params["w3"], params["b3"],
    )
    vmem_spec = pl.BlockSpec(memory_space=pltpu.MemorySpace.VMEM)

    # Advisory cost estimate: 3 matmuls + one rsqrt per BN feature.
    flops = 2 * n * (1024 * 256 + 256 * 64 + 64 * 128)
    transcendentals = 1024 + 256 + 64
    bytes_accessed = sum(int(a.size) * a.dtype.itemsize for a in args) + n * 128 * 4

    return pl.pallas_call(
        lof_kernel,
        out_shape=jax.ShapeDtypeStruct((n, 128), jnp.float32),
        in_specs=[vmem_spec] * len(args),
        out_specs=vmem_spec,
        cost_estimate=pl.CostEstimate(flops=flops,
                                      transcendentals=transcendentals,
                                      bytes_accessed=bytes_accessed),
        # Explicit budget: safe on v7x (64 MiB physical) and v5e/v6e (128 MiB).
        compiler_params=pltpu.CompilerParams(vmem_limit_bytes=32 * 1024 * 1024),
    )(*args)


def init_params(key):
    # PyTorch Linear stores W as (out, in) and computes x @ W.T; generate
    # (out, in) with std=0.001, transpose to (in, out), then store as bf16
    # so the weight DMA (the dominant cost at small N) is halved.
    k1, k2, k3 = jax.random.split(key, 3)
    w1 = (jax.random.normal(k1, (256, 1024), jnp.float32) * 0.001).T
    w2 = (jax.random.normal(k2, (64, 256), jnp.float32) * 0.001).T
    w3 = (jax.random.normal(k3, (128, 64), jnp.float32) * 0.001).T
    return dict(
        g1=jnp.ones((1, 1024), jnp.float32), be1=jnp.zeros((1, 1024), jnp.float32),
        w1=w1.astype(jnp.bfloat16), b1=jnp.zeros((1, 256), jnp.float32),
        g2=jnp.ones((1, 256), jnp.float32), be2=jnp.zeros((1, 256), jnp.float32),
        w2=w2.astype(jnp.bfloat16), b2=jnp.zeros((1, 64), jnp.float32),
        g3=jnp.ones((1, 64), jnp.float32), be3=jnp.zeros((1, 64), jnp.float32),
        w3=w3.astype(jnp.bfloat16), b3=jnp.zeros((1, 128), jnp.float32),
    )


def reference_bf16(x, p):
    # Plain-JAX reference with the same numerics as the kernel
    # (bf16 matmul operands, f32 accumulation).
    h = x
    for g, be, w, b in ((p["g1"], p["be1"], p["w1"], p["b1"]),
                        (p["g2"], p["be2"], p["w2"], p["b2"]),
                        (p["g3"], p["be3"], p["w3"], p["b3"])):
        h = _leaky_relu(_bn_train(h, g, be))
        h = jnp.dot(h.astype(jnp.bfloat16), w,
                    preferred_element_type=jnp.float32) + b
    return h


def reference_f32(x, p):
    # Full-f32 semantics of the original PyTorch module (weights upcast).
    h = x
    for g, be, w, b in ((p["g1"], p["be1"], p["w1"], p["b1"]),
                        (p["g2"], p["be2"], p["w2"], p["b2"]),
                        (p["g3"], p["be3"], p["w3"], p["b3"])):
        h = _leaky_relu(_bn_train(h, g, be))
        h = h @ w.astype(jnp.float32) + b
    return h


if __name__ == "__main__":
    key = jax.random.PRNGKey(0)
    kx, kp = jax.random.split(key)
    N = 16
    x = jax.random.normal(kx, (N, 1024), jnp.float32)
    params = init_params(kp)

    out = jax.block_until_ready(lof_block_fc_bottleneck(x, params))

    ref = reference_bf16(x, params)
    ref_full = reference_f32(x, params)

    assert out.shape == (N, 128)
    # Tight check against the matching-precision reference.
    assert jnp.allclose(out, ref, atol=1e-4, rtol=1e-4)
    # Loose sanity check against the full-f32 module semantics.
    assert jnp.allclose(out, ref_full, atol=2e-3, rtol=2e-2)
    print("KERNEL_OK")
</pallas_src>

<mosaic_0001>
module attributes {stable_mosaic.version = 11 : i64} {
  func.func @lof_kernel(%arg0: memref<16x1024xf32, #tpu.memory_space<vmem>>, %arg1: memref<1x1024xf32, #tpu.memory_space<vmem>>, %arg2: memref<1x1024xf32, #tpu.memory_space<vmem>>, %arg3: memref<1024x256xbf16, #tpu.memory_space<vmem>>, %arg4: memref<1x256xf32, #tpu.memory_space<vmem>>, %arg5: memref<1x256xf32, #tpu.memory_space<vmem>>, %arg6: memref<1x256xf32, #tpu.memory_space<vmem>>, %arg7: memref<256x64xbf16, #tpu.memory_space<vmem>>, %arg8: memref<1x64xf32, #tpu.memory_space<vmem>>, %arg9: memref<1x64xf32, #tpu.memory_space<vmem>>, %arg10: memref<1x64xf32, #tpu.memory_space<vmem>>, %arg11: memref<64x128xbf16, #tpu.memory_space<vmem>>, %arg12: memref<1x128xf32, #tpu.memory_space<vmem>>, %arg13: memref<16x128xf32, #tpu.memory_space<vmem>>) attributes {dimension_semantics = [], scalar_prefetch = 0 : i64, scratch_operands = 0 : i64, tpu.core_type = #tpu.core_type<tc>} {
    %c0 = arith.constant 0 : index
    %c0_0 = arith.constant 0 : index
    %0 = vector.load %arg0[%c0, %c0_0] : memref<16x1024xf32, #tpu.memory_space<vmem>>, vector<16x1024xf32>
    %c0_1 = arith.constant 0 : index
    %c0_2 = arith.constant 0 : index
    %1 = vector.load %arg1[%c0_1, %c0_2] : memref<1x1024xf32, #tpu.memory_space<vmem>>, vector<1x1024xf32>
    %c0_3 = arith.constant 0 : index
    %c0_4 = arith.constant 0 : index
    %2 = vector.load %arg2[%c0_3, %c0_4] : memref<1x1024xf32, #tpu.memory_space<vmem>>, vector<1x1024xf32>
    %c0_5 = arith.constant 0 : index
    %c0_6 = arith.constant 0 : index
    %3 = vector.load %arg3[%c0_5, %c0_6] : memref<1024x256xbf16, #tpu.memory_space<vmem>>, vector<1024x256xbf16>
    %c0_7 = arith.constant 0 : index
    %c0_8 = arith.constant 0 : index
    %4 = vector.load %arg4[%c0_7, %c0_8] : memref<1x256xf32, #tpu.memory_space<vmem>>, vector<1x256xf32>
    %cst = arith.constant dense<0.000000e+00> : vector<1024xf32>
    %5 = vector.multi_reduction <add>, %0, %cst [0] : vector<16x1024xf32> to vector<1024xf32>
    %6 = vector.shape_cast %5 : vector<1024xf32> to vector<1x1024xf32>
    %cst_9 = arith.constant 1.600000e+01 : f32
    %7 = vector.broadcast %cst_9 : f32 to vector<1x1024xf32>
    %8 = arith.divf %6, %7 : vector<1x1024xf32>
    %9 = arith.mulf %0, %0 : vector<16x1024xf32>
    %cst_10 = arith.constant dense<0.000000e+00> : vector<1024xf32>
    %10 = vector.multi_reduction <add>, %9, %cst_10 [0] : vector<16x1024xf32> to vector<1024xf32>
    %11 = vector.shape_cast %10 : vector<1024xf32> to vector<1x1024xf32>
    %cst_11 = arith.constant 1.600000e+01 : f32
    %12 = vector.broadcast %cst_11 : f32 to vector<1x1024xf32>
    %13 = arith.divf %11, %12 : vector<1x1024xf32>
    %14 = arith.mulf %8, %8 : vector<1x1024xf32>
    %15 = arith.subf %13, %14 : vector<1x1024xf32>
    %16 = vector.broadcast %8 : vector<1x1024xf32> to vector<16x1024xf32>
    %17 = arith.subf %0, %16 : vector<16x1024xf32>
    %18 = vector.broadcast %1 : vector<1x1024xf32> to vector<16x1024xf32>
    %19 = arith.mulf %18, %17 : vector<16x1024xf32>
    %cst_12 = arith.constant 9.99999974E-6 : f32
    %20 = vector.broadcast %cst_12 : f32 to vector<1x1024xf32>
    %21 = arith.addf %15, %20 : vector<1x1024xf32>
    %22 = math.rsqrt %21 : vector<1x1024xf32>
    %23 = vector.broadcast %22 : vector<1x1024xf32> to vector<16x1024xf32>
    %24 = arith.mulf %19, %23 : vector<16x1024xf32>
    %25 = vector.broadcast %2 : vector<1x1024xf32> to vector<16x1024xf32>
    %26 = arith.addf %24, %25 : vector<16x1024xf32>
    %cst_13 = arith.constant 0.000000e+00 : f32
    %27 = vector.broadcast %cst_13 : f32 to vector<16x1024xf32>
    %28 = arith.cmpf ogt, %26, %27 : vector<16x1024xf32>
    %cst_14 = arith.constant 1.000000e-01 : f32
    %29 = vector.broadcast %cst_14 : f32 to vector<16x1024xf32>
    %30 = arith.mulf %29, %26 : vector<16x1024xf32>
    %31 = arith.select %28, %26, %30 : vector<16x1024xi1>, vector<16x1024xf32>
    %32 = arith.truncf %31 : vector<16x1024xf32> to vector<16x1024xbf16>
    %cst_15 = arith.constant dense<0.000000e+00> : vector<16x256xf32>
    %33 = tpu.matmul %32, %3, %cst_15 {dimension_numbers = #tpu.dot_dimension_numbers<[1], [0], [0], [1], [0, 0, 1, 1], [], []>} : vector<16x1024xbf16>, vector<1024x256xbf16>, vector<16x256xf32> -> vector<16x256xf32>
    %34 = vector.broadcast %4 : vector<1x256xf32> to vector<16x256xf32>
    %35 = arith.addf %33, %34 : vector<16x256xf32>
    %c0_16 = arith.constant 0 : index
    %c0_17 = arith.constant 0 : index
    %36 = vector.load %arg5[%c0_16, %c0_17] : memref<1x256xf32, #tpu.memory_space<vmem>>, vector<1x256xf32>
    %c0_18 = arith.constant 0 : index
    %c0_19 = arith.constant 0 : index
    %37 = vector.load %arg6[%c0_18, %c0_19] : memref<1x256xf32, #tpu.memory_space<vmem>>, vector<1x256xf32>
    %c0_20 = arith.constant 0 : index
    %c0_21 = arith.constant 0 : index
    %38 = vector.load %arg7[%c0_20, %c0_21] : memref<256x64xbf16, #tpu.memory_space<vmem>>, vector<256x64xbf16>
    %c0_22 = arith.constant 0 : index
    %c0_23 = arith.constant 0 : index
    %39 = vector.load %arg8[%c0_22, %c0_23] : memref<1x64xf32, #tpu.memory_space<vmem>>, vector<1x64xf32>
    %cst_24 = arith.constant dense<0.000000e+00> : vector<256xf32>
    %40 = vector.multi_reduction <add>, %35, %cst_24 [0] : vector<16x256xf32> to vector<256xf32>
    %41 = vector.shape_cast %40 : vector<256xf32> to vector<1x256xf32>
    %cst_25 = arith.constant 1.600000e+01 : f32
    %42 = vector.broadcast %cst_25 : f32 to vector<1x256xf32>
    %43 = arith.divf %41, %42 : vector<1x256xf32>
    %44 = arith.mulf %35, %35 : vector<16x256xf32>
    %cst_26 = arith.constant dense<0.000000e+00> : vector<256xf32>
    %45 = vector.multi_reduction <add>, %44, %cst_26 [0] : vector<16x256xf32> to vector<256xf32>
    %46 = vector.shape_cast %45 : vector<256xf32> to vector<1x256xf32>
    %cst_27 = arith.constant 1.600000e+01 : f32
    %47 = vector.broadcast %cst_27 : f32 to vector<1x256xf32>
    %48 = arith.divf %46, %47 : vector<1x256xf32>
    %49 = arith.mulf %43, %43 : vector<1x256xf32>
    %50 = arith.subf %48, %49 : vector<1x256xf32>
    %51 = vector.broadcast %43 : vector<1x256xf32> to vector<16x256xf32>
    %52 = arith.subf %35, %51 : vector<16x256xf32>
    %53 = vector.broadcast %36 : vector<1x256xf32> to vector<16x256xf32>
    %54 = arith.mulf %53, %52 : vector<16x256xf32>
    %cst_28 = arith.constant 9.99999974E-6 : f32
    %55 = vector.broadcast %cst_28 : f32 to vector<1x256xf32>
    %56 = arith.addf %50, %55 : vector<1x256xf32>
    %57 = math.rsqrt %56 : vector<1x256xf32>
    %58 = vector.broadcast %57 : vector<1x256xf32> to vector<16x256xf32>
    %59 = arith.mulf %54, %58 : vector<16x256xf32>
    %60 = vector.broadcast %37 : vector<1x256xf32> to vector<16x256xf32>
    %61 = arith.addf %59, %60 : vector<16x256xf32>
    %cst_29 = arith.constant 0.000000e+00 : f32
    %62 = vector.broadcast %cst_29 : f32 to vector<16x256xf32>
    %63 = arith.cmpf ogt, %61, %62 : vector<16x256xf32>
    %cst_30 = arith.constant 1.000000e-01 : f32
    %64 = vector.broadcast %cst_30 : f32 to vector<16x256xf32>
    %65 = arith.mulf %64, %61 : vector<16x256xf32>
    %66 = arith.select %63, %61, %65 : vector<16x256xi1>, vector<16x256xf32>
    %67 = arith.truncf %66 : vector<16x256xf32> to vector<16x256xbf16>
    %cst_31 = arith.constant dense<0.000000e+00> : vector<16x64xf32>
    %68 = tpu.matmul %67, %38, %cst_31 {dimension_numbers = #tpu.dot_dimension_numbers<[1], [0], [0], [1], [0, 0, 1, 1], [], []>} : vector<16x256xbf16>, vector<256x64xbf16>, vector<16x64xf32> -> vector<16x64xf32>
    %69 = vector.broadcast %39 : vector<1x64xf32> to vector<16x64xf32>
    %70 = arith.addf %68, %69 : vector<16x64xf32>
    %c0_32 = arith.constant 0 : index
    %c0_33 = arith.constant 0 : index
    %71 = vector.load %arg9[%c0_32, %c0_33] : memref<1x64xf32, #tpu.memory_space<vmem>>, vector<1x64xf32>
    %c0_34 = arith.constant 0 : index
    %c0_35 = arith.constant 0 : index
    %72 = vector.load %arg10[%c0_34, %c0_35] : memref<1x64xf32, #tpu.memory_space<vmem>>, vector<1x64xf32>
    %c0_36 = arith.constant 0 : index
    %c0_37 = arith.constant 0 : index
    %73 = vector.load %arg11[%c0_36, %c0_37] : memref<64x128xbf16, #tpu.memory_space<vmem>>, vector<64x128xbf16>
    %c0_38 = arith.constant 0 : index
    %c0_39 = arith.constant 0 : index
    %74 = vector.load %arg12[%c0_38, %c0_39] : memref<1x128xf32, #tpu.memory_space<vmem>>, vector<1x128xf32>
    %cst_40 = arith.constant dense<0.000000e+00> : vector<64xf32>
    %75 = vector.multi_reduction <add>, %70, %cst_40 [0] : vector<16x64xf32> to vector<64xf32>
    %76 = vector.shape_cast %75 : vector<64xf32> to vector<1x64xf32>
    %cst_41 = arith.constant 1.600000e+01 : f32
    %77 = vector.broadcast %cst_41 : f32 to vector<1x64xf32>
    %78 = arith.divf %76, %77 : vector<1x64xf32>
    %79 = arith.mulf %70, %70 : vector<16x64xf32>
    %cst_42 = arith.constant dense<0.000000e+00> : vector<64xf32>
    %80 = vector.multi_reduction <add>, %79, %cst_42 [0] : vector<16x64xf32> to vector<64xf32>
    %81 = vector.shape_cast %80 : vector<64xf32> to vector<1x64xf32>
    %cst_43 = arith.constant 1.600000e+01 : f32
    %82 = vector.broadcast %cst_43 : f32 to vector<1x64xf32>
    %83 = arith.divf %81, %82 : vector<1x64xf32>
    %84 = arith.mulf %78, %78 : vector<1x64xf32>
    %85 = arith.subf %83, %84 : vector<1x64xf32>
    %86 = vector.broadcast %78 : vector<1x64xf32> to vector<16x64xf32>
    %87 = arith.subf %70, %86 : vector<16x64xf32>
    %88 = vector.broadcast %71 : vector<1x64xf32> to vector<16x64xf32>
    %89 = arith.mulf %88, %87 : vector<16x64xf32>
    %cst_44 = arith.constant 9.99999974E-6 : f32
    %90 = vector.broadcast %cst_44 : f32 to vector<1x64xf32>
    %91 = arith.addf %85, %90 : vector<1x64xf32>
    %92 = math.rsqrt %91 : vector<1x64xf32>
    %93 = vector.broadcast %92 : vector<1x64xf32> to vector<16x64xf32>
    %94 = arith.mulf %89, %93 : vector<16x64xf32>
    %95 = vector.broadcast %72 : vector<1x64xf32> to vector<16x64xf32>
    %96 = arith.addf %94, %95 : vector<16x64xf32>
    %cst_45 = arith.constant 0.000000e+00 : f32
    %97 = vector.broadcast %cst_45 : f32 to vector<16x64xf32>
    %98 = arith.cmpf ogt, %96, %97 : vector<16x64xf32>
    %cst_46 = arith.constant 1.000000e-01 : f32
    %99 = vector.broadcast %cst_46 : f32 to vector<16x64xf32>
    %100 = arith.mulf %99, %96 : vector<16x64xf32>
    %101 = arith.select %98, %96, %100 : vector<16x64xi1>, vector<16x64xf32>
    %102 = arith.truncf %101 : vector<16x64xf32> to vector<16x64xbf16>
    %cst_47 = arith.constant dense<0.000000e+00> : vector<16x128xf32>
    %103 = tpu.matmul %102, %73, %cst_47 {dimension_numbers = #tpu.dot_dimension_numbers<[1], [0], [0], [1], [0, 0, 1, 1], [], []>} : vector<16x64xbf16>, vector<64x128xbf16>, vector<16x128xf32> -> vector<16x128xf32>
    %104 = vector.broadcast %74 : vector<1x128xf32> to vector<16x128xf32>
    %105 = arith.addf %103, %104 : vector<16x128xf32>
    %c0_48 = arith.constant 0 : index
    %c0_49 = arith.constant 0 : index
    %106 = vector.load %arg13[%c0_48, %c0_49] : memref<16x128xf32, #tpu.memory_space<vmem>>, vector<16x128xf32>
    tpu.vector_store %arg13[%c0_48, %c0_49], %105 {strides = array<i32>} : memref<16x128xf32, #tpu.memory_space<vmem>>, vector<16x128xf32>,
    return
  }
}

</mosaic_0001>

<bundles_post_ra>
// kernel: tpu_custom_call.1
= control target key start
LH: loop header
LB: loop body
LE: loop exit
PB: predicated region body
PF: predicated region fallthrough
CT: control target
= control target key end

     0   :  { %18 = vsyncpa [#allocation3], 0  ;;  %s2755_s0 = inlined_call_operand.vmem [shape: f32[16,1024], index: 0, kind: input, shape index: {}]   ;;  %s2756_s1 = inlined_call_operand.vmem [shape: f32[1,1024], index: 1, kind: input, shape index: {}]   ;;  %s2757_s2 = inlined_call_operand.vmem [shape: f32[1,1024], index: 2, kind: input, shape index: {}]   ;;  %s2758_s3 = inlined_call_operand.hbm [shape: bf16[1024,256], index: 3, kind: input, shape index: {}]   ;;  %s2759_s4 = inlined_call_operand.vmem [shape: f32[1,256], index: 4, kind: input, shape index: {}]   ;;  %s2760_s5 = inlined_call_operand.vmem [shape: f32[1,256], index: 5, kind: input, shape index: {}]   ;;  %s2761_s6 = inlined_call_operand.vmem [shape: f32[1,256], index: 6, kind: input, shape index: {}]   ;;  %s2762_s7 = inlined_call_operand.vmem [shape: bf16[256,64], index: 7, kind: input, shape index: {}]   ;;  %s2763_s8 = inlined_call_operand.vmem [shape: f32[1,64], index: 8, kind: input, shape index: {}]   ;;  %s2764_s9 = inlined_call_operand.vmem [shape: f32[1,64], index: 9, kind: input, shape index: {}]   ;;  %s2765_s10 = inlined_call_operand.vmem [shape: f32[1,64], index: 10, kind: input, shape index: {}]   ;;  %s2766_s11 = inlined_call_operand.vmem [shape: bf16[64,128], index: 11, kind: input, shape index: {}]   ;;  %s2767_s12 = inlined_call_operand.vmem [shape: f32[1,128], index: 12, kind: input, shape index: {}]   ;;  %s2768_s13 = inlined_call_operand.hbm [shape: f32[16,128], index: 13, kind: output, shape index: {}]  }
   0x1   :  { %19 = vsyncpa [#allocation4], 0  ;;  %s2317_s25 = smov [#allocation2]  }
   0x2   :  { %s31_s26 = sshll.u32 %s2317_s25, 4  ;;  %s32_s26 = int_to_ptr.vmem [resolvable:$true] %s31_s26 }
   0x3   :  { %s2281_s27 = scalar_lea.vmem %s32_s26, 16384  ;;  %p2286_p1 = scmp.lt.s32.totalorder %s32_s26, %s32_s26 }
   0x4   :  { %p2282_p0 = scmp.ne.s32.totalorder %s32_s26, %s2281_s27  ;;  %p2287_p2 = scmp.lt.s32.totalorder %s2281_s27, %s2281_s27 }
   0x6   :  { %p2288_p3 = por %p2287_p2, %p2286_p1 }
   0x8   :  { %p2289_p4 = pnand %p2288_p3, %p2282_p0 }
   0xa   :  { %2292 = shalt.err (!%p2289_p4)
}
   0xb   :  { %s2318_s28 = smov 128   ;;  %s2319_s29 = smov 8  }
   0xc   :  { %37 = dma.hbm_to_vmem [thread:$0]  %s2758_s3, 16384, %s32_s26, [#allocation3], %s2318_s28, %s2318_s28, %s2319_s29  }
   0xd   :  { %2313 = dma.done.wait [#allocation3], 16384  }
   0xe   :  { %2314 = vsyncadd [#allocation3], 4294950912  ;;  %v2039_v0 = vld [vmem:[#allocation2 + $0x74] ss:$8 sps:$4 sm:$0xff]   ;;  %v2043_v2 = vld [vmem:[#allocation2 + $0x70] ss:$8 sps:$4 sm:$0xff]  }
   0xf   :  { %v2041_v1 = vld [vmem:[#allocation2 + $0x174] ss:$8 sps:$4 sm:$0xff]   ;;  %1237 = vmatprep.subr.bf16.mxu0 %v2039_v0  ;;  %v2044_v3 = vld [vmem:[#allocation2 + $0x170] ss:$8 sps:$4 sm:$0xff]   ;;  %v2045_v4 = vld [vmem:[#allocation2 + $0x64] ss:$8 sps:$4 sm:$0xff]  }
  0x10   :  { %1280 = vmatprep.subr.bf16.mxu1 %v2041_v1  ;;  %1238 = vmatpush1.bf16.msra.mxu0 %v2043_v2  ;;  %v2047_v5 = vld [vmem:[#allocation2 + $0x164] ss:$8 sps:$4 sm:$0xff]   ;;  %v2049_v6 = vld [vmem:[#allocation2 + $0x60] ss:$8 sps:$4 sm:$0xff]   ;;  %v2051_v8 = vld [vmem:[#allocation2 + $0x54] ss:$8 sps:$4 sm:$0xff]  }
  0x11   :  { %1281 = vmatpush1.bf16.msra.mxu1 %v2044_v3  ;;  %1239 = vmatprep.subr.bf16.mxu0 %v2045_v4  ;;  %v2050_v7 = vld [vmem:[#allocation2 + $0x160] ss:$8 sps:$4 sm:$0xff]   ;;  %v2053_v9 = vld [vmem:[#allocation2 + $0x154] ss:$8 sps:$4 sm:$0xff]   ;;  %v2055_v10 = vld [vmem:[#allocation2 + $0x50] ss:$8 sps:$4 sm:$0xff]  }
  0x12   :  { %1282 = vmatprep.subr.bf16.mxu1 %v2047_v5  ;;  %v2056_v11 = vld [vmem:[#allocation2 + $0x150] ss:$8 sps:$4 sm:$0xff]   ;;  %v2057_v12 = vld [vmem:[#allocation2 + $0x44] ss:$8 sps:$4 sm:$0xff]   ;;  %v2061_v14 = vld [vmem:[#allocation2 + $0x40] ss:$8 sps:$4 sm:$0xff]  }
  0x13   :  { %v2059_v13 = vld [vmem:[#allocation2 + $0x144] ss:$8 sps:$4 sm:$0xff]   ;;  %v2062_v15 = vld [vmem:[#allocation2 + $0x140] ss:$8 sps:$4 sm:$0xff]   ;;  %v2063_v16 = vld [vmem:[#allocation2 + $0x34] ss:$8 sps:$4 sm:$0xff]  }
  0x14   :  { %1240 = vmatpush1.bf16.msra.mxu0 %v2049_v6  ;;  %v2065_v17 = vld [vmem:[#allocation2 + $0x134] ss:$8 sps:$4 sm:$0xff]   ;;  %v2067_v18 = vld [vmem:[#allocation2 + $0x30] ss:$8 sps:$4 sm:$0xff]   ;;  %v2069_v20 = vld [vmem:[#allocation2 + $0x24] ss:$8 sps:$4 sm:$0xff]  }
  0x15   :  { %1283 = vmatpush1.bf16.msra.mxu1 %v2050_v7  ;;  %1241 = vmatprep.subr.bf16.mxu0 %v2051_v8  ;;  %v2068_v19 = vld [vmem:[#allocation2 + $0x130] ss:$8 sps:$4 sm:$0xff]   ;;  %v2071_v21 = vld [vmem:[#allocation2 + $0x124] ss:$8 sps:$4 sm:$0xff]   ;;  %v2073_v22 = vld [vmem:[#allocation2 + $0x20] ss:$8 sps:$4 sm:$0xff]  }
  0x16   :  { %1284 = vmatprep.subr.bf16.mxu1 %v2053_v9  ;;  %v2074_v23 = vld [vmem:[#allocation2 + $0x120] ss:$8 sps:$4 sm:$0xff]   ;;  %v2075_v24 = vld [vmem:[#allocation2 + $0x14] ss:$8 sps:$4 sm:$0xff]   ;;  %v2079_v26 = vld [vmem:[#allocation2 + $0x10] ss:$8 sps:$4 sm:$0xff]  }
  0x17   :  { %v2077_v25 = vld [vmem:[#allocation2 + $0x114] ss:$8 sps:$4 sm:$0xff]   ;;  %v2080_v27 = vld [vmem:[#allocation2 + $0x110] ss:$8 sps:$4 sm:$0xff]   ;;  %v2081_v28 = vld [vmem:[#allocation2 + $0x4] ss:$8 sps:$4 sm:$0xff]  }
  0x18   :  { %1242 = vmatpush1.bf16.msra.mxu0 %v2055_v10  ;;  %v2083_v29 = vld [vmem:[#allocation2 + $0x104] ss:$8 sps:$4 sm:$0xff]   ;;  %v2085_v30 = vld [vmem:[#allocation2] ss:$8 sps:$4 sm:$0xff]   ;;  %v2087_v32 = vld [vmem:[#allocation2 + $0xf4] ss:$8 sps:$4 sm:$0xff]  }
  0x19   :  { %1285 = vmatpush1.bf16.msra.mxu1 %v2056_v11  ;;  %1243 = vmatprep.subr.bf16.mxu0 %v2057_v12  ;;  %v2086_v31 = vld [vmem:[#allocation2 + $0x100] ss:$8 sps:$4 sm:$0xff]   ;;  %v2089_v33 = vld [vmem:[#allocation2 + $0x1f4] ss:$8 sps:$4 sm:$0xff]   ;;  %v2091_v34 = vld [vmem:[#allocation2 + $0xf0] ss:$8 sps:$4 sm:$0xff]  }
  0x1a   :  { %1286 = vmatprep.subr.bf16.mxu1 %v2059_v13  ;;  %v2092_v35 = vld [vmem:[#allocation2 + $0x1f0] ss:$8 sps:$4 sm:$0xff]   ;;  %v2093_v36 = vld [vmem:[#allocation2 + $0xe4] ss:$8 sps:$4 sm:$0xff]   ;;  %v2097_v38 = vld [vmem:[#allocation2 + $0xe0] ss:$8 sps:$4 sm:$0xff]  }
  0x1b   :  { %v2095_v37 = vld [vmem:[#allocation2 + $0x1e4] ss:$8 sps:$4 sm:$0xff]   ;;  %v2098_v39 = vld [vmem:[#allocation2 + $0x1e0] ss:$8 sps:$4 sm:$0xff]   ;;  %v2099_v40 = vld [vmem:[#allocation2 + $0xd4] ss:$8 sps:$4 sm:$0xff]  }
  0x1c   :  { %1244 = vmatpush1.bf16.msra.mxu0 %v2061_v14  ;;  %v2101_v41 = vld [vmem:[#allocation2 + $0x1d4] ss:$8 sps:$4 sm:$0xff]   ;;  %v2103_v42 = vld [vmem:[#allocation2 + $0xd0] ss:$8 sps:$4 sm:$0xff]   ;;  %v2105_v44 = vld [vmem:[#allocation2 + $0xc4] ss:$8 sps:$4 sm:$0xff]  }
  0x1d   :  { %1287 = vmatpush1.bf16.msra.mxu1 %v2062_v15  ;;  %1245 = vmatprep.subr.bf16.mxu0 %v2063_v16  ;;  %v2104_v43 = vld [vmem:[#allocation2 + $0x1d0] ss:$8 sps:$4 sm:$0xff]   ;;  %v2107_v45 = vld [vmem:[#allocation2 + $0x1c4] ss:$8 sps:$4 sm:$0xff]   ;;  %v2109_v47 = vld [vmem:[#allocation2 + $0xc0] ss:$8 sps:$4 sm:$0xff]  }
  0x1e   :  { %1288 = vmatprep.subr.bf16.mxu1 %v2065_v17  ;;  %v2402_v46 = vld [vmem:[%s2755_s0 + $0x8] sm:$0xff]  ;;  %v2418_v53 = vld [vmem:[%s2755_s0 + $0x18] sm:$0xff]  ;;  %v2428_v55 = vld [vmem:[%s2755_s0] sm:$0xff] }
  0x1f   :  { %v2110_v48 = vld [vmem:[#allocation2 + $0x1c0] ss:$8 sps:$4 sm:$0xff]   ;;  %v273_v50 = vmul.f32 %v2402_v46, %v2402_v46  ;;  %v2423_v54 = vld [vmem:[%s2755_s0 + $0x58] sm:$0xff]  ;;  %v275_v59 = vmul.f32 %v2418_v53, %v2418_v53  ;;  %v272_v4 = vmul.f32 %v2428_v55, %v2428_v55  ;;  %v2450_v9 = vld [vmem:[%s2755_s0 + $0x10] sm:$0xff] }
  0x20   :  { %1246 = vmatpush1.bf16.msra.mxu0 %v2067_v18  ;;  %v2407_v49 = vld [vmem:[%s2755_s0 + $0x48] sm:$0xff]  ;;  %v2111_v56 = vld [vmem:[#allocation2 + $0xb4] ss:$8 sps:$4 sm:$0xff]   ;;  %v228_v58 = vadd.f32 %v2423_v54, %v2418_v53  ;;  %v2437_v60 = vld [vmem:[%s2755_s0 + $0x40] sm:$0xff]  ;;  %v283_v0 = vmul.f32 %v2423_v54, %v2423_v54 }
  0x21   :  { %1289 = vmatpush1.bf16.msra.mxu1 %v2068_v19  ;;  %1247 = vmatprep.subr.bf16.mxu0 %v2069_v20  ;;  %v214_v51 = vadd.f32 %v2407_v49, %v2402_v46  ;;  %v281_v52 = vmul.f32 %v2407_v49, %v2407_v49  ;;  %v2113_v57 = vld [vmem:[#allocation2 + $0x1b4] ss:$8 sps:$4 sm:$0xff]   ;;  %v2115_v61 = vld [vmem:[#allocation2 + $0xb0] ss:$8 sps:$4 sm:$0xff]   ;;  %v207_v3 = vadd.f32 %v2437_v60, %v2428_v55  ;;  %v2117_v11 = vld [vmem:[#allocation2 + $0xa4] ss:$8 sps:$4 sm:$0xff]  }
  0x22   :  { %1290 = vmatprep.subr.bf16.mxu1 %v2071_v21  ;;  %v2116_v1 = vld [vmem:[#allocation2 + $0x1b0] ss:$8 sps:$4 sm:$0xff]   ;;  %v229_v2 = vrot.slane %v228_v58, 4  ;;  %v309_v7 = vadd.f32 %v283_v0, %v275_v59  ;;  %v280_v8 = vmul.f32 %v2437_v60, %v2437_v60  ;;  %v2119_v12 = vld [vmem:[#allocation2 + $0x1a4] ss:$8 sps:$4 sm:$0xff]  }
  0x23   :  { %v215_v62 = vrot.slane %v214_v51, 4  ;;  %v295_v63 = vadd.f32 %v281_v52, %v273_v50  ;;  %v2455_v10 = vld [vmem:[%s2755_s0 + $0x50] sm:$0xff]  ;;  %v208_v14 = vrot.slane %v207_v3, 4  ;;  %v2121_v19 = vld [vmem:[#allocation2 + $0xa0] ss:$8 sps:$4 sm:$0xff]  }
  0x24   :  { %1248 = vmatpush1.bf16.msra.mxu0 %v2073_v22  ;;  %v230_v13 = vadd.f32 %v229_v2, %v228_v58  ;;  %v310_v17 = vrot.slane %v309_v7, 4  ;;  %v288_v18 = vadd.f32 %v280_v8, %v272_v4  ;;  %v221_v22 = vadd.f32 %v2455_v10, %v2450_v9  ;;  %v2131_v52 = vld [vmem:[#allocation2 + $0x184] ss:$8 sps:$4 sm:$0xff]   ;;  %v2133_v0 = vld [vmem:[#allocation2 + $0x80] ss:$8 sps:$4 sm:$0xff]  }
  0x25   :  { %1291 = vmatpush1.bf16.msra.mxu1 %v2074_v23  ;;  %1249 = vmatprep.subr.bf16.mxu0 %v2075_v24  ;;  %v216_v5 = vadd.f32 %v215_v62, %v214_v51  ;;  %v296_v6 = vrot.slane %v295_v63, 4  ;;  %v209_v21 = vadd.f32 %v208_v14, %v207_v3  ;;  %v274_v23 = vmul.f32 %v2450_v9, %v2450_v9  ;;  %v2122_v24 = vld [vmem:[#allocation2 + $0x1a0] ss:$8 sps:$4 sm:$0xff]  }
  0x26   :  { %1292 = vmatprep.subr.bf16.mxu1 %v2077_v25  ;;  %v231_v20 = vrot.slane %v230_v13, 2  ;;  %v2123_v25 = vld [vmem:[#allocation2 + $0x94] ss:$8 sps:$4 sm:$0xff]   ;;  %v2134_v4 = vld [vmem:[#allocation2 + $0x180] ss:$8 sps:$4 sm:$0xff]  }
  0x27   :  { %v217_v15 = vrot.slane %v216_v5, 2  ;;  %v297_v16 = vadd.f32 %v296_v6, %v295_v63 }
  0x28   :  { %1250 = vmatpush1.bf16.msra.mxu0 %v2079_v26 }
  0x29   :  { %1293 = vmatpush1.bf16.msra.mxu1 %v2080_v27  ;;  %1251 = vmatprep.subr.bf16.mxu0 %v2081_v28  ;;  %v218_v26 = vadd.f32 %v217_v15, %v216_v5  ;;  %v298_v27 = vrot.slane %v297_v16, 2  ;;  %v311_v28 = vadd.f32 %v310_v17, %v309_v7  ;;  %v385_v7 = vlaneseq  ;;  %v2137_v15 = vld [vmem:[#allocation2 + $0x274] ss:$8 sps:$4 sm:$0xff]  }
  0x2a   :  { %1294 = vmatprep.subr.bf16.mxu1 %v2083_v29  ;;  %v289_v29 = vrot.slane %v288_v18, 4 }
  0x2c   :  { %1252 = vmatpush1.bf16.msra.mxu0 %v2085_v30  ;;  %v2125_v30 = vld [vmem:[#allocation2 + $0x194] ss:$8 sps:$4 sm:$0xff]  }
  0x2d   :  { %1295 = vmatpush1.bf16.msra.mxu1 %v2086_v31  ;;  %1253 = vmatprep.subr.bf16.mxu0 %v2087_v32  ;;  %v232_v31 = vadd.f32 %v231_v20, %v230_v13  ;;  %v210_v32 = vrot.slane %v209_v21, 2  ;;  %v2473_v20 = vshrl.u32 %v385_v7, 7 }
  0x2e   :  { %1296 = vmatprep.subr.bf16.mxu1 %v2089_v33  ;;  %v222_v33 = vrot.slane %v221_v22, 4 }
  0x30   :  { %1254 = vmatpush2.bf16.msra.mxu0 %v2091_v34  ;;  %v282_v34 = vmul.f32 %v2455_v10, %v2455_v10 }
  0x31   :  { %1297 = vmatpush2.bf16.msra.mxu1 %v2092_v35  ;;  %1255 = vmatprep.subr.bf16.mxu0 %v2093_v36  ;;  %v219_v35 = vrot.slane %v218_v26, 1  ;;  %v299_v36 = vadd.f32 %v298_v27, %v297_v16  ;;  %v2140_v16 = vld [vmem:[#allocation2 + $0x374] ss:$8 sps:$4 sm:$0xff]   ;;  %v403_v27 = vsub.s32 4, %v2473_v20 }
  0x32   :  { %1298 = vmatprep.subr.bf16.mxu1 %v2095_v37  ;;  %v312_v37 = vrot.slane %v311_v28, 2 }
  0x34   :  { %1256 = vmatpush2.bf16.msra.mxu0 %v2097_v38  ;;  %v290_v38 = vadd.f32 %v289_v29, %v288_v18  ;;  %v313_v50 = vadd.f32 %v312_v37, %v311_v28  ;;  %v411_v28 = vsub.s32 6, %v2473_v20 }
  0x35   :  { %1299 = vmatpush2.bf16.msra.mxu1 %v2098_v39  ;;  %1257 = vmatprep.subr.bf16.mxu0 %v2099_v40  ;;  %v2127_v39 = vld [vmem:[#allocation2 + $0x90] ss:$8 sps:$4 sm:$0xff]  }
  0x36   :  { %1300 = vmatprep.subr.bf16.mxu1 %v2101_v41  ;;  %v2128_v40 = vld [vmem:[#allocation2 + $0x190] ss:$8 sps:$4 sm:$0xff]   ;;  %v233_v41 = vrot.slane %v232_v31, 1  ;;  %v291_v51 = vrot.slane %v290_v38, 2  ;;  %v314_v63 = vrot.slane %v313_v50, 1 }
  0x38   :  { %1258 = vmatpush2.bf16.msra.mxu0 %v2103_v42  ;;  %v211_v42 = vadd.f32 %v210_v32, %v209_v21  ;;  %v292_v3 = vadd.f32 %v291_v51, %v290_v38 }
  0x39   :  { %1301 = vmatpush2.bf16.msra.mxu1 %v2104_v43  ;;  %1259 = vmatprep.subr.bf16.mxu0 %v2105_v44  ;;  %v223_v43 = vadd.f32 %v222_v33, %v221_v22  ;;  %v302_v44 = vadd.f32 %v282_v34, %v274_v23  ;;  %v2482_v33 = vld [vmem:[%s2756_s1] sm:$0xff]  ;;  %v2485_v34 = vsub.s32 1, %v2473_v20 }
  0x3a   :  { %1302 = vmatprep.subr.bf16.mxu1 %v2107_v45  ;;  %v2129_v45 = vld [vmem:[#allocation2 + $0x84] ss:$8 sps:$4 sm:$0xff]  }
  0x3b   :  { %v224_v58 = vrot.slane %v223_v43, 2  ;;  %v303_v59 = vrot.slane %v302_v44, 4 }
  0x3c   :  { %1260 = vmatpush2.bf16.msra.mxu0 %v2109_v47  ;;  %v220_v47 = vadd.f32 %v219_v35, %v218_v26  ;;  %v2490_v35 = vld [vmem:[%s2757_s2] sm:$0xff] }
  0x3d   :  { %1303 = vmatpush2.bf16.msra.mxu1 %v2110_v48  ;;  %1261 = vmatprep.subr.bf16.mxu0 %v2111_v56  ;;  %v300_v48 = vrot.slane %v299_v36, 1  ;;  %v234_v56 = vadd.f32 %v233_v41, %v232_v31  ;;  %v225_v8 = vadd.f32 %v224_v58, %v223_v43  ;;  %v304_v14 = vadd.f32 %v303_v59, %v302_v44 }
  0x3e   :  { %1304 = vmatprep.subr.bf16.mxu1 %v2113_v57  ;;  %v212_v57 = vrot.slane %v211_v42, 1  ;;  %v2501_v41 = vrot.slane %v2482_v33, %v411_v28  ;;  %v2513_v51 = vrot.slane %v2490_v35, %v411_v28 }
  0x3f   :  { %v301_v62 = vadd.f32 %v300_v48, %v299_v36  ;;  %v305_v26 = vrot.slane %v304_v14, 2 }
  0x40   :  { %1262 = vmatpush2.bf16.msra.mxu0 %v2115_v61  ;;  %v2463_v61 = vmul.f32 0.0625, %v220_v47  ;;  %v213_v2 = vadd.f32 %v212_v57, %v211_v42  ;;  %v399_v42 = vsub.s32 3, %v2473_v20 }
  0x41   :  { %1305 = vmatpush2.bf16.msra.mxu1 %v2116_v1  ;;  %1263 = vmatprep.subr.bf16.mxu0 %v2117_v11  ;;  %v2465_v1 = vmul.f32 0.0625, %v234_v56  ;;  %v345_v5 = vmul.f32 0.0625, %v301_v62  ;;  %v315_v11 = vadd.f32 %v314_v63, %v313_v50  ;;  %v306_v32 = vadd.f32 %v305_v26, %v304_v14 }
  0x42   :  { %1306 = vmatprep.subr.bf16.mxu1 %v2119_v12  ;;  %v353_v6 = vmul.f32 %v2463_v61, %v2463_v61  ;;  %v2471_v13 = vmul.f32 0.0625, %v213_v2  ;;  %v369_v47 = vsub.f32 %v2402_v46, %v2463_v61  ;;  %v377_v48 = vsub.f32 %v2407_v49, %v2463_v61 }
  0x43   :  { %v355_v12 = vmul.f32 %v2465_v1, %v2465_v1  ;;  %v347_v18 = vmul.f32 0.0625, %v315_v11  ;;  %v307_v38 = vrot.slane %v306_v32, 1  ;;  %v392_v50 = vrot.slane %v2482_v33, %v2485_v34 }
  0x44   :  { %1264 = vmatpush2.bf16.msra.mxu0 %v2121_v19  ;;  %v361_v17 = vsub.f32 %v345_v5, %v353_v6  ;;  %v293_v19 = vrot.slane %v292_v3, 1  ;;  %v352_v22 = vmul.f32 %v2471_v13, %v2471_v13  ;;  %v2516_v56 = vsub.s32 0, %v2473_v20 }
  0x45   :  { %1307 = vmatpush2.bf16.msra.mxu1 %v2122_v24  ;;  %1265 = vmatprep.subr.bf16.mxu0 %v2123_v25  ;;  %v363_v23 = vsub.f32 %v347_v18, %v355_v12  ;;  %v226_v25 = vrot.slane %v225_v8, 1  ;;  %v308_v44 = vadd.f32 %v307_v38, %v306_v32  ;;  %v371_v57 = vsub.f32 %v2418_v53, %v2465_v1 }
  0x46   :  { %1308 = vmatprep.subr.bf16.mxu1 %v2125_v30  ;;  %v442_v21 = vadd.f32 1e-05, %v361_v17  ;;  %v294_v24 = vadd.f32 %v293_v19, %v292_v3  ;;  %v379_v46 = vsub.f32 %v2423_v54, %v2465_v1  ;;  %v400_v58 = vrot.slane %v2482_v33, %v399_v42 }
  0x47   :  { %v444_v29 = vadd.f32 1e-05, %v363_v23  ;;  %v227_v31 = vadd.f32 %v226_v25, %v225_v8  ;;  %v426_v59 = vmul.f32 %v392_v50, %v369_v47  ;;  %v434_v61 = vmul.f32 %v392_v50, %v377_v48 }
  0x48   :  { %1266 = vmatpush2.bf16.msra.mxu0 %v2127_v39  ;;  %2251 = vrsqrt.f32 %v442_v21  ;;  %v344_v30 = vmul.f32 0.0625, %v294_v24  ;;  %v2495_v39 = vrot.slane %v2482_v33, %v403_v27  ;;  %v481_v63 = vrot.slane %v2490_v35, %v2485_v34 }
  0x49   :  { %1309 = vmatpush2.bf16.msra.mxu1 %v2128_v40  ;;  %1267 = vmatprep.subr.bf16.mxu0 %v2129_v45  ;;  %2253 = vrsqrt.f32 %v444_v29  ;;  %v2492_v37 = vmul.f32 0.0625, %v227_v31  ;;  %v2498_v40 = vrot.slane %v2490_v35, %v403_v27  ;;  %v388_v2 = vrot.slane %v2482_v33, %v2516_v56 }
  0x4a   :  { %1310 = vmatprep.subr.bf16.mxu1 %v2131_v52  ;;  %v360_v36 = vsub.f32 %v344_v30, %v352_v22  ;;  %v346_v52 = vmul.f32 0.0625, %v308_v44  ;;  %v395_v53 = vsub.s32 2, %v2473_v20  ;;  %v436_v54 = vmul.f32 %v400_v58, %v379_v46 }
  0x4b   :  { %v354_v45 = vmul.f32 %v2492_v37, %v2492_v37  ;;  %v376_v1 = vsub.f32 %v2437_v60, %v2471_v13  ;;  %v489_v7 = vrot.slane %v2490_v35, %v399_v42  ;;  %v378_v22 = vsub.f32 %v2455_v10, %v2492_v37 }
  0x4c   :  { %1268 = vmatpush2.bf16.msra.mxu0 %v2133_v0  ;;  %v441_v43 = vadd.f32 1e-05, %v360_v36  ;;  %v368_v0 = vsub.f32 %v2428_v55, %v2471_v13  ;;  %v396_v17 = vrot.slane %v2482_v33, %v395_v53  ;;  %v370_v13 = vsub.f32 %v2450_v9, %v2492_v37 }
  0x4d   :  { %1311 = vmatpush2.bf16.msra.mxu1 %v2134_v4  ;;  %1323 = vmatprep.subr.bf16.mxu0 %v2137_v15  ;;  %v362_v49 = vsub.f32 %v346_v52, %v354_v45  ;;  %v428_v4 = vmul.f32 %v400_v58, %v371_v57  ;;  %v477_v26 = vrot.slane %v2490_v35, %v2516_v56  ;;  %v2544_v52 = vld [vmem:[%s2755_s0 + $0x28] sm:$0xff] }
  0x4e   :  { %1366 = vmatprep.subr.bf16.mxu1 %v2140_v16  ;;  %2255 = vrsqrt.f32 %v441_v43  ;;  %v425_v55 = vmul.f32 %v388_v2, %v368_v0  ;;  %v433_v16 = vmul.f32 %v388_v2, %v376_v1  ;;  %v427_v36 = vmul.f32 %v396_v17, %v370_v13  ;;  %v2549_v57 = vld [vmem:[%s2755_s0 + $0x68] sm:$0xff]  ;;  %v2591_v13 = vld [vmem:[%s2755_s0 + $0x70] sm:$0xff] }
  0x4f   :  { %v443_v62 = vadd.f32 1e-05, %v362_v49  ;;  %v435_v9 = vmul.f32 %v396_v17, %v378_v22  ;;  %v485_v43 = vrot.slane %v2490_v35, %v395_v53  ;;  %v2135_v49 = vld [vmem:[#allocation2 + $0x270] ss:$8 sps:$4 sm:$0xff]   ;;  %v2141_v1 = vld [vmem:[#allocation2 + $0x260] ss:$8 sps:$4 sm:$0xff]  }
  0x50   :  { %v2146_v17 = vld [vmem:[#allocation2 + $0x364] ss:$8 sps:$4 sm:$0xff]  }
  0x51   :  { %2257 = vrsqrt.f32 %v443_v62  ;;  %v2558_v62 = vld [vmem:[%s2755_s0 + $0x38] sm:$0xff] }
  0x55   :  { %v2252_v3 = vpop.eup %2251 }
  0x56   :  { %v458_v5 = vmul.f32 %v2252_v3, %v426_v59  ;;  %v466_v6 = vmul.f32 %v2252_v3, %v434_v61  ;;  %v2254_v8 = vpop.eup %2253  ;;  %v242_v59 = vadd.f32 %v2549_v57, %v2544_v52  ;;  %v277_v61 = vmul.f32 %v2544_v52, %v2544_v52  ;;  %v2143_v3 = vld [vmem:[#allocation2 + $0x264] ss:$8 sps:$4 sm:$0xff]  }
  0x57   :  { %v460_v14 = vmul.f32 %v2254_v8, %v428_v4  ;;  %v468_v15 = vmul.f32 %v2254_v8, %v436_v54  ;;  %v285_v4 = vmul.f32 %v2549_v57, %v2549_v57  ;;  %v2570_v54 = vld [vmem:[%s2755_s0 + $0x20] sm:$0xff] }
  0x58   :  { %v515_v11 = vadd.f32 %v481_v63, %v458_v5  ;;  %v523_v12 = vadd.f32 %v481_v63, %v466_v6  ;;  %v2563_v63 = vld [vmem:[%s2755_s0 + $0x78] sm:$0xff]  ;;  %v243_v5 = vrot.slane %v242_v59, 4 }
  0x59   :  { %v517_v21 = vadd.f32 %v489_v7, %v460_v14  ;;  %v525_v60 = vadd.f32 %v489_v7, %v468_v15  ;;  %v256_v6 = vadd.f32 %v2563_v63, %v2558_v62  ;;  %v279_v7 = vmul.f32 %v2558_v62, %v2558_v62  ;;  %v2138_v15 = vld [vmem:[#allocation2 + $0x370] ss:$8 sps:$4 sm:$0xff]  }
  0x5a   :  { %vm531_vm0 = vcmp.gt.f32.partialorder %v515_v11, 0.0  ;;  %vm539_vm1 = vcmp.gt.f32.partialorder %v523_v12, 0.0  ;;  %v547_v18 = vmul.f32 0.1, %v515_v11  ;;  %v555_v19 = vmul.f32 0.1, %v523_v12 }
  0x5b   :  { %v2256_v23 = vpop.eup %2255  ;;  %vm533_vm2 = vcmp.gt.f32.partialorder %v517_v21, 0.0  ;;  %vm541_vm3 = vcmp.gt.f32.partialorder %v525_v60, 0.0  ;;  %v549_v28 = vmul.f32 0.1, %v517_v21  ;;  %v557_v29 = vmul.f32 0.1, %v525_v60 }
  0x5c   :  { %v563_v24 = vsel %vm531_vm0, %v515_v11, %v547_v18  ;;  %v571_v25 = vsel %vm539_vm1, %v523_v12, %v555_v19  ;;  %v457_v30 = vmul.f32 %v2256_v23, %v425_v55  ;;  %v465_v31 = vmul.f32 %v2256_v23, %v433_v16  ;;  %v2581_v11 = vld [vmem:[%s2755_s0 + $0x60] sm:$0xff]  ;;  %v2586_v12 = vld [vmem:[%s2755_s0 + $0x30] sm:$0xff] }
  0x5d   :  { %v579_v27 = vpack.c.bf16 %v571_v25, %v563_v24  ;;  %v565_v32 = vsel %vm533_vm2, %v517_v21, %v549_v28  ;;  %v573_v38 = vsel %vm541_vm3, %v525_v60, %v557_v29  ;;  %v287_v8 = vmul.f32 %v2563_v63, %v2563_v63  ;;  %v2149_v16 = vld [vmem:[#allocation2 + $0x254] ss:$8 sps:$4 sm:$0xff]  }
  0x5e   :  { %v514_v42 = vadd.f32 %v477_v26, %v457_v30  ;;  %v522_v10 = vadd.f32 %v477_v26, %v465_v31  ;;  %v581_v37 = vpack.c.bf16 %v573_v38, %v565_v32  ;;  %v2258_v44 = vpop.eup %2257  ;;  %v244_v18 = vadd.f32 %v243_v5, %v242_v59  ;;  %v2144_v31 = vld [vmem:[#allocation2 + $0x360] ss:$8 sps:$4 sm:$0xff]   ;;  %v2155_v32 = vld [vmem:[#allocation2 + $0x244] ss:$8 sps:$4 sm:$0xff]  }
  0x5f   :  { %1269 = vmatprep.mubr.bf16.mxu0 %v579_v27  ;;  %v459_v48 = vmul.f32 %v2258_v44, %v427_v36  ;;  %v467_v50 = vmul.f32 %v2258_v44, %v435_v9  ;;  %v323_v19 = vadd.f32 %v285_v4, %v277_v61  ;;  %v257_v21 = vrot.slane %v256_v6, 4  ;;  %v2147_v27 = vld [vmem:[#allocation2 + $0x250] ss:$8 sps:$4 sm:$0xff]  }
  0x60   :  { %vm530_vm4 = vcmp.gt.f32.partialorder %v514_v42, 0.0  ;;  %vm538_vm5 = vcmp.gt.f32.partialorder %v522_v10, 0.0  ;;  %v546_v45 = vmul.f32 0.1, %v514_v42  ;;  %v554_v47 = vmul.f32 0.1, %v522_v10  ;;  %1312 = vmatprep.mubr.bf16.mxu1 %v581_v37 }
  0x61   :  { %v516_v2 = vadd.f32 %v485_v43, %v459_v48  ;;  %v524_v53 = vadd.f32 %v485_v43, %v467_v50  ;;  %v337_v60 = vadd.f32 %v287_v8, %v279_v7  ;;  %v235_v24 = vadd.f32 %v2581_v11, %v2570_v54 }
  0x62   :  { %v562_v46 = vsel %vm530_vm4, %v514_v42, %v546_v45  ;;  %v570_v58 = vsel %vm538_vm5, %v522_v10, %v554_v47  ;;  %v276_v25 = vmul.f32 %v2570_v54, %v2570_v54  ;;  %v245_v28 = vrot.slane %v244_v18, 2  ;;  %v2152_v10 = vld [vmem:[#allocation2 + $0x354] ss:$8 sps:$4 sm:$0xff]  }
  0x63   :  { %v578_v0 = vpack.c.bf16 %v570_v58, %v562_v46  ;;  %vm532_vm6 = vcmp.gt.f32.partialorder %v516_v2, 0.0  ;;  %vm540_vm7 = vcmp.gt.f32.partialorder %v524_v53, 0.0  ;;  %v548_v55 = vmul.f32 0.1, %v516_v2  ;;  %v2153_v58 = vld [vmem:[#allocation2 + $0x240] ss:$8 sps:$4 sm:$0xff]  }
  0x64   :  { %v556_v14 = vmul.f32 0.1, %v524_v53  ;;  %v324_v29 = vrot.slane %v323_v19, 4  ;;  %v258_v30 = vadd.f32 %v257_v21, %v256_v6  ;;  %v338_v36 = vrot.slane %v337_v60, 4  ;;  %v2158_v6 = vld [vmem:[#allocation2 + $0x344] ss:$8 sps:$4 sm:$0xff]  }
  0x65   :  { %1270 = vmatmul.mubr.bf16.vlgmr.msra.gmra.mxu0 %v578_v0  ;;  %v564_v22 = vsel %vm532_vm6, %v516_v2, %v548_v55  ;;  %v236_v9 = vrot.slane %v235_v24, 4  ;;  %v284_v38 = vmul.f32 %v2581_v11, %v2581_v11  ;;  %v249_v42 = vadd.f32 %v2591_v13, %v2586_v12  ;;  %v2150_v2 = vld [vmem:[#allocation2 + $0x350] ss:$8 sps:$4 sm:$0xff]  }
  0x66   :  { %1324 = vmatpush1.bf16.msra.mxu0 %v2135_v49  ;;  %v572_v23 = vsel %vm540_vm7, %v524_v53, %v556_v14  ;;  %v246_v37 = vadd.f32 %v245_v28, %v244_v18  ;;  %v325_v43 = vadd.f32 %v324_v29, %v323_v19  ;;  %v259_v44 = vrot.slane %v258_v30, 2  ;;  %v2161_v53 = vld [vmem:[#allocation2 + $0x234] ss:$8 sps:$4 sm:$0xff]   ;;  %v2159_v18 = vld [vmem:[#allocation2 + $0x230] ss:$8 sps:$4 sm:$0xff]  }
  0x67   :  { %1325 = vmatprep.subr.bf16.mxu0 %v2143_v3  ;;  %v580_v26 = vpack.c.bf16 %v572_v23, %v564_v22  ;;  %v278_v45 = vmul.f32 %v2586_v12, %v2586_v12  ;;  %v339_v47 = vadd.f32 %v338_v36, %v337_v60  ;;  %v237_v48 = vadd.f32 %v236_v9, %v235_v24  ;;  %v2156_v23 = vld [vmem:[#allocation2 + $0x340] ss:$8 sps:$4 sm:$0xff]   ;;  %v2167_v24 = vld [vmem:[#allocation2 + $0x224] ss:$8 sps:$4 sm:$0xff]   ;;  %v2164_v29 = vld [vmem:[#allocation2 + $0x334] ss:$8 sps:$4 sm:$0xff]  }
  0x68   :  { %v316_v50 = vadd.f32 %v284_v38, %v276_v25  ;;  %v250_v46 = vrot.slane %v249_v42, 4  ;;  %v247_v49 = vrot.slane %v246_v37, 1  ;;  %v326_v59 = vrot.slane %v325_v43, 2 }
  0x69   :  { %1313 = vmatmul.mubr.bf16.vlgmr.msra.gmra.mxu1 %v580_v26  ;;  %v260_v61 = vadd.f32 %v259_v44, %v258_v30  ;;  %v286_v0 = vmul.f32 %v2591_v13, %v2591_v13  ;;  %v340_v3 = vrot.slane %v339_v47, 2  ;;  %v238_v4 = vrot.slane %v237_v48, 2  ;;  %v2173_v44 = vld [vmem:[#allocation2 + $0x214] ss:$8 sps:$4 sm:$0xff]  }
  0x6a   :  { %1326 = vmatpush1.bf16.msra.mxu0 %v2141_v1  ;;  %1367 = vmatpush1.bf16.msra.mxu1 %v2138_v15  ;;  %v317_v1 = vrot.slane %v316_v50, 4  ;;  %v251_v5 = vadd.f32 %v250_v46, %v249_v42  ;;  %v248_v7 = vadd.f32 %v247_v49, %v246_v37  ;;  %v327_v8 = vadd.f32 %v326_v59, %v325_v43  ;;  %v2165_v42 = vld [vmem:[#allocation2 + $0x220] ss:$8 sps:$4 sm:$0xff]   ;;  %v2162_v43 = vld [vmem:[#allocation2 + $0x330] ss:$8 sps:$4 sm:$0xff]  }
  0x6b   :  { %1327 = vmatprep.subr.bf16.mxu0 %v2149_v16  ;;  %1368 = vmatprep.subr.bf16.mxu1 %v2146_v17  ;;  %v261_v55 = vrot.slane %v260_v61, 1  ;;  %v341_v14 = vadd.f32 %v340_v3, %v339_v47  ;;  %v239_v15 = vadd.f32 %v238_v4, %v237_v48  ;;  %v330_v22 = vadd.f32 %v286_v0, %v278_v45 }
  0x6c   :  { %v318_v16 = vadd.f32 %v317_v1, %v316_v50  ;;  %v252_v17 = vrot.slane %v251_v5, 2  ;;  %v2605_v19 = vmul.f32 0.0625, %v248_v7  ;;  %v328_v21 = vrot.slane %v327_v8, 1  ;;  %v2170_v50 = vld [vmem:[#allocation2 + $0x324] ss:$8 sps:$4 sm:$0xff]  }
  0x6d   :  { %v262_v60 = vadd.f32 %v261_v55, %v260_v61  ;;  %v342_v25 = vrot.slane %v341_v14, 1  ;;  %v240_v26 = vrot.slane %v239_v15, 1  ;;  %v331_v37 = vrot.slane %v330_v22, 4  ;;  %v2171_v1 = vld [vmem:[#allocation2 + $0x210] ss:$8 sps:$4 sm:$0xff]  }
  0x6e   :  { %1328 = vmatpush1.bf16.msra.mxu0 %v2147_v27  ;;  %1369 = vmatpush1.bf16.msra.mxu1 %v2144_v31  ;;  %v319_v27 = vrot.slane %v318_v16, 2  ;;  %v253_v28 = vadd.f32 %v252_v17, %v251_v5  ;;  %v329_v30 = vadd.f32 %v328_v21, %v327_v8  ;;  %v357_v31 = vmul.f32 %v2605_v19, %v2605_v19  ;;  %v2179_v7 = vld [vmem:[#allocation2 + $0x204] ss:$8 sps:$4 sm:$0xff]   ;;  %v2177_v21 = vld [vmem:[#allocation2 + $0x200] ss:$8 sps:$4 sm:$0xff]  }
  0x6f   :  { %1329 = vmatprep.subr.bf16.mxu0 %v2155_v32  ;;  %1370 = vmatprep.subr.bf16.mxu1 %v2152_v10  ;;  %v2609_v32 = vmul.f32 0.0625, %v262_v60  ;;  %v343_v36 = vadd.f32 %v342_v25, %v341_v14  ;;  %v241_v9 = vadd.f32 %v240_v26, %v239_v15  ;;  %v332_v4 = vadd.f32 %v331_v37, %v330_v22  ;;  %v2176_v14 = vld [vmem:[#allocation2 + $0x314] ss:$8 sps:$4 sm:$0xff]   ;;  %v2174_v22 = vld [vmem:[#allocation2 + $0x310] ss:$8 sps:$4 sm:$0xff]  }
  0x70   :  { %v320_v38 = vadd.f32 %v319_v27, %v318_v16  ;;  %v349_v10 = vmul.f32 0.0625, %v329_v30  ;;  %v254_v48 = vrot.slane %v253_v28, 1  ;;  %v407_v8 = vsub.s32 5, %v2473_v20  ;;  %v2182_v26 = vld [vmem:[#allocation2 + $0x304] ss:$8 sps:$4 sm:$0xff]  }
  0x71   :  { %v351_v45 = vmul.f32 0.0625, %v343_v36  ;;  %v359_v47 = vmul.f32 %v2609_v32, %v2609_v32  ;;  %v333_v55 = vrot.slane %v332_v4, 2  ;;  %v415_v15 = vsub.s32 7, %v2473_v20  ;;  %v2189_v37 = vld [vmem:[#allocation2 + $0x2e0] ss:$8 sps:$4 sm:$0xff]  }
  0x72   :  { %1330 = vmatpush1.bf16.msra.mxu0 %v2153_v58  ;;  %1371 = vmatpush1.bf16.msra.mxu1 %v2150_v2  ;;  %v365_v46 = vsub.f32 %v349_v10, %v357_v31  ;;  %v2613_v58 = vmul.f32 0.0625, %v241_v9  ;;  %v321_v49 = vrot.slane %v320_v38, 1  ;;  %v255_v3 = vadd.f32 %v254_v48, %v253_v28  ;;  %v2183_v9 = vld [vmem:[#allocation2 + $0x2f0] ss:$8 sps:$4 sm:$0xff]   ;;  %v2197_v48 = vld [vmem:[#allocation2 + $0x2d4] ss:$8 sps:$4 sm:$0xff]  }
  0x73   :  { %1331 = vmatprep.subr.bf16.mxu0 %v2161_v53  ;;  %1372 = vmatprep.subr.bf16.mxu1 %v2158_v6  ;;  %v367_v59 = vsub.f32 %v351_v45, %v359_v47  ;;  %v2168_v6 = vld [vmem:[#allocation2 + $0x320] ss:$8 sps:$4 sm:$0xff]   ;;  %v373_v27 = vsub.f32 %v2544_v52, %v2605_v19  ;;  %v381_v20 = vsub.f32 %v2549_v57, %v2605_v19  ;;  %v2186_v47 = vld [vmem:[#allocation2 + $0x3f0] ss:$8 sps:$4 sm:$0xff]   ;;  %vm2321_vm4 = vmmov 0  }
  0x74   :  { %v446_v61 = vadd.f32 1e-05, %v365_v46  ;;  %v322_v0 = vadd.f32 %v321_v49, %v320_v38  ;;  %v356_v2 = vmul.f32 %v2613_v58, %v2613_v58  ;;  %v2619_v17 = vmul.f32 0.0625, %v255_v3  ;;  %v2180_v52 = vld [vmem:[#allocation2 + $0x300] ss:$8 sps:$4 sm:$0xff]  }
  0x75   :  { %v448_v53 = vadd.f32 1e-05, %v367_v59  ;;  %v416_v28 = vrot.slane %v2482_v33, %v415_v15  ;;  %v383_v30 = vsub.f32 %v2563_v63, %v2609_v32  ;;  %v2191_v38 = vld [vmem:[#allocation2 + $0x2e4] ss:$8 sps:$4 sm:$0xff]   ;;  %v372_v63 = vsub.f32 %v2570_v54, %v2613_v58 }
  0x76   :  { %1332 = vmatpush1.bf16.msra.mxu0 %v2159_v18  ;;  %1373 = vmatpush1.bf16.msra.mxu1 %v2156_v23  ;;  %2259 = vrsqrt.f32 %v446_v61  ;;  %v348_v5 = vmul.f32 0.0625, %v322_v0  ;;  %v334_v18 = vadd.f32 %v333_v55, %v332_v4  ;;  %v2185_v23 = vld [vmem:[#allocation2 + $0x2f4] ss:$8 sps:$4 sm:$0xff]   ;;  %v358_v36 = vmul.f32 %v2619_v17, %v2619_v17  ;;  %v2194_v59 = vld [vmem:[#allocation2 + $0x3e4] ss:$8 sps:$4 sm:$0xff]  }
  0x77   :  { %1333 = vmatprep.subr.bf16.mxu0 %v2167_v24  ;;  %1374 = vmatprep.subr.bf16.mxu1 %v2164_v29  ;;  %2261 = vrsqrt.f32 %v448_v53  ;;  %v408_v24 = vrot.slane %v2482_v33, %v407_v8  ;;  %v375_v29 = vsub.f32 %v2558_v62, %v2609_v32  ;;  %v2188_v33 = vld [vmem:[#allocation2 + $0x3f4] ss:$8 sps:$4 sm:$0xff]   ;;  %v440_v62 = vmul.f32 %v416_v28, %v383_v30  ;;  %v2207_v30 = vld [vmem:[#allocation2 + $0x2b0] ss:$8 sps:$4 sm:$0xff]  }
  0x78   :  { %v364_v16 = vsub.f32 %v348_v5, %v356_v2  ;;  %v335_v25 = vrot.slane %v334_v18, 1  ;;  %v429_v53 = vmul.f32 %v2495_v39, %v372_v63  ;;  %v2200_v5 = vld [vmem:[#allocation2 + $0x3d4] ss:$8 sps:$4 sm:$0xff]   ;;  %v382_v55 = vsub.f32 %v2591_v13, %v2619_v17  ;;  %v2210_v63 = vld [vmem:[#allocation2 + $0x3b0] ss:$8 sps:$4 sm:$0xff]  }
  0x79   :  { %v430_v19 = vmul.f32 %v408_v24, %v373_v27  ;;  %v432_v10 = vmul.f32 %v416_v28, %v375_v29  ;;  %v2209_v13 = vld [vmem:[#allocation2 + $0x2b4] ss:$8 sps:$4 sm:$0xff]   ;;  %v2206_v27 = vld [vmem:[#allocation2 + $0x3c4] ss:$8 sps:$4 sm:$0xff]   ;;  %vm1694_vm5 = vcmask 523264  }
  0x7a   :  { %1334 = vmatpush1.bf16.msra.mxu0 %v2165_v42  ;;  %1375 = vmatpush1.bf16.msra.mxu1 %v2162_v43  ;;  %v445_v60 = vadd.f32 1e-05, %v364_v16  ;;  %v336_v31 = vadd.f32 %v335_v25, %v334_v18  ;;  %v438_v42 = vmul.f32 %v408_v24, %v381_v20  ;;  %v497_v43 = vrot.slane %v2490_v35, %v407_v8  ;;  %v2201_v18 = vld [vmem:[#allocation2 + $0x2c0] ss:$8 sps:$4 sm:$0xff]   ;;  %v2198_v24 = vld [vmem:[#allocation2 + $0x3d0] ss:$8 sps:$4 sm:$0xff]  }
  0x7b   :  { %1335 = vmatprep.subr.bf16.mxu0 %v2173_v44  ;;  %1376 = vmatprep.subr.bf16.mxu1 %v2170_v50  ;;  %v380_v44 = vsub.f32 %v2581_v11, %v2613_v58  ;;  %v505_v50 = vrot.slane %v2490_v35, %v415_v15  ;;  %v2195_v11 = vld [vmem:[#allocation2 + $0x2d0] ss:$8 sps:$4 sm:$0xff]   ;;  %v374_v35 = vsub.f32 %v2586_v12, %v2619_v17 }
  0x7c   :  { %2263 = vrsqrt.f32 %v445_v60  ;;  %v350_v57 = vmul.f32 0.0625, %v336_v31 }
  0x7d   :  { %v437_v4 = vmul.f32 %v2495_v39, %v380_v44  ;;  %v2218_v44 = vld [vmem:[#allocation2 + $0x3a4] ss:$8 sps:$4 sm:$0xff]  }
  0x7e   :  { %1336 = vmatpush1.bf16.msra.mxu0 %v2171_v1  ;;  %1377 = vmatpush1.bf16.msra.mxu1 %v2168_v6  ;;  %v366_v32 = vsub.f32 %v350_v57, %v358_v36  ;;  %v2192_v1 = vld [vmem:[#allocation2 + $0x3e0] ss:$8 sps:$4 sm:$0xff]   ;;  %v2203_v6 = vld [vmem:[#allocation2 + $0x2c4] ss:$8 sps:$4 sm:$0xff]   ;;  %v439_v57 = vmul.f32 %v2501_v41, %v382_v55  ;;  %v2240_v55 = vld [vmem:[%s2762_s7 + $0x18] sm:$0xff]  }
  0x7f   :  { %1337 = vmatprep.subr.bf16.mxu0 %v2179_v7  ;;  %1378 = vmatprep.subr.bf16.mxu1 %v2176_v14 }
  0x80   :  { %v447_v46 = vadd.f32 1e-05, %v366_v32  ;;  %v2221_v32 = vld [vmem:[#allocation2 + $0x294] ss:$8 sps:$4 sm:$0xff]  }
  0x82   :  { %1338 = vmatpush1.bf16.msra.mxu0 %v2177_v21  ;;  %1379 = vmatpush1.bf16.msra.mxu1 %v2174_v22  ;;  %2265 = vrsqrt.f32 %v447_v46 }
  0x83   :  { %1339 = vmatprep.subr.bf16.mxu0 %v2185_v23  ;;  %1380 = vmatprep.subr.bf16.mxu1 %v2182_v26  ;;  %v2260_v45 = vpop.eup %2259 }
  0x84   :  { %v2262_v49 = vpop.eup %2261  ;;  %v462_v54 = vmul.f32 %v2260_v45, %v430_v19  ;;  %v470_v61 = vmul.f32 %v2260_v45, %v438_v42 }
  0x85   :  { %v464_v0 = vmul.f32 %v2262_v49, %v432_v10  ;;  %v472_v2 = vmul.f32 %v2262_v49, %v440_v62  ;;  %v2213_v62 = vld [vmem:[#allocation2 + $0x2a0] ss:$8 sps:$4 sm:$0xff]  }
  0x86   :  { %1340 = vmatpush2.bf16.msra.mxu0 %v2183_v9  ;;  %1381 = vmatpush1.bf16.msra.mxu1 %v2180_v52  ;;  %v519_v58 = vadd.f32 %v497_v43, %v462_v54  ;;  %v527_v3 = vadd.f32 %v497_v43, %v470_v61  ;;  %v2204_v9 = vld [vmem:[#allocation2 + $0x3c0] ss:$8 sps:$4 sm:$0xff]   ;;  %v2215_v52 = vld [vmem:[#allocation2 + $0x2a4] ss:$8 sps:$4 sm:$0xff]  }
  0x87   :  { %1341 = vmatprep.subr.bf16.mxu0 %v2191_v38  ;;  %1382 = vmatprep.subr.bf16.mxu1 %v2188_v33  ;;  %v521_v7 = vadd.f32 %v505_v50, %v464_v0  ;;  %v529_v8 = vadd.f32 %v505_v50, %v472_v2  ;;  %v431_v38 = vmul.f32 %v2501_v41, %v374_v35  ;;  %v2212_v33 = vld [vmem:[#allocation2 + $0x3b4] ss:$8 sps:$4 sm:$0xff]   ;;  %v2227_v50 = vld [vmem:[#allocation2 + $0x284] ss:$8 sps:$4 sm:$0xff]   ;;  %v2225_v0 = vld [vmem:[#allocation2 + $0x280] ss:$8 sps:$4 sm:$0xff]  }
  0x88   :  { %vm535_vm8 = vcmp.gt.f32.partialorder %v519_v58, 0.0  ;;  %vm543_vm9 = vcmp.gt.f32.partialorder %v527_v3, 0.0  ;;  %v551_v14 = vmul.f32 0.1, %v519_v58  ;;  %v559_v15 = vmul.f32 0.1, %v527_v3 }
  0x89   :  { %v2264_v16 = vpop.eup %2263  ;;  %vm537_vm10 = vcmp.gt.f32.partialorder %v521_v7, 0.0  ;;  %vm545_vm11 = vcmp.gt.f32.partialorder %v529_v8, 0.0  ;;  %v553_v39 = vmul.f32 0.1, %v521_v7  ;;  %v561_v12 = vmul.f32 0.1, %v529_v8 }
  0x8a   :  { %1342 = vmatpush2.bf16.msra.mxu0 %v2189_v37  ;;  %1383 = vmatpush2.bf16.msra.mxu1 %v2186_v47  ;;  %v567_v21 = vsel %vm535_vm8, %v519_v58, %v551_v14  ;;  %v575_v60 = vsel %vm543_vm9, %v527_v3, %v559_v15  ;;  %v461_v22 = vmul.f32 %v2264_v16, %v429_v53  ;;  %v2216_v47 = vld [vmem:[#allocation2 + $0x3a0] ss:$8 sps:$4 sm:$0xff]   ;;  %v2222_v53 = vld [vmem:[#allocation2 + $0x390] ss:$8 sps:$4 sm:$0xff]  }
  0x8b   :  { %1343 = vmatprep.subr.bf16.mxu0 %v2197_v48  ;;  %1384 = vmatprep.subr.bf16.mxu1 %v2194_v59  ;;  %v469_v23 = vmul.f32 %v2264_v16, %v437_v4  ;;  %v583_v17 = vpack.c.bf16 %v575_v60, %v567_v21  ;;  %v569_v25 = vsel %vm537_vm10, %v521_v7, %v553_v39  ;;  %v2219_v48 = vld [vmem:[#allocation2 + $0x290] ss:$8 sps:$4 sm:$0xff]   ;;  %v2224_v59 = vld [vmem:[#allocation2 + $0x394] ss:$8 sps:$4 sm:$0xff]   ;;  %v2238_v7 = vld [vmem:[%s2762_s7 + $0x20] sm:$0xff]  }
  0x8c   :  { %v577_v26 = vsel %vm545_vm11, %v529_v8, %v561_v12  ;;  %v518_v28 = vadd.f32 %v2498_v40, %v461_v22  ;;  %v2231_v58 = vld [vmem:[%s2762_s7 + $0x78] sm:$0xff]   ;;  %v2233_v4 = vld [vmem:[%s2762_s7 + $0x70] sm:$0xff]   ;;  %v2243_v16 = vld [vmem:[%s2762_s7 + $0x48] sm:$0xff]  }
  0x8d   :  { %v585_v20 = vpack.c.bf16 %v577_v26, %v569_v25  ;;  %v526_v29 = vadd.f32 %v2498_v40, %v469_v23  ;;  %1355 = vmatprep.mubr.bf16.mxu0 %v583_v17  ;;  %v2232_v3 = vld [vmem:[%s2762_s7 + $0x38] sm:$0xff]   ;;  %v2234_v35 = vld [vmem:[%s2762_s7 + $0x30] sm:$0xff]   ;;  %v2244_v39 = vld [vmem:[%s2762_s7 + $0x8] sm:$0xff]  }
  0x8e   :  { %1344 = vmatpush2.bf16.msra.mxu0 %v2195_v11  ;;  %1385 = vmatpush2.bf16.msra.mxu1 %v2192_v1  ;;  %vm534_vm12 = vcmp.gt.f32.partialorder %v518_v28, 0.0  ;;  %v550_v31 = vmul.f32 0.1, %v518_v28  ;;  %v2228_v11 = vld [vmem:[#allocation2 + $0x380] ss:$8 sps:$4 sm:$0xff]   ;;  %v2239_v8 = vld [vmem:[%s2762_s7 + $0x58] sm:$0xff]  }
  0x8f   :  { %1345 = vmatprep.subr.bf16.mxu0 %v2203_v6  ;;  %1386 = vmatprep.subr.bf16.mxu1 %v2200_v5  ;;  %vm542_vm13 = vcmp.gt.f32.partialorder %v526_v29, 0.0  ;;  %v558_v36 = vmul.f32 0.1, %v526_v29  ;;  %v2266_v10 = vpop.eup %2265  ;;  %v2235_v1 = vld [vmem:[%s2762_s7 + $0x68] sm:$0xff]   ;;  %v2237_v6 = vld [vmem:[%s2762_s7 + $0x60] sm:$0xff]   ;;  %v2241_v14 = vld [vmem:[%s2762_s7 + $0x50] sm:$0xff]  }
  0x90   :  { %1398 = vmatprep.mubr.bf16.mxu1 %v585_v20  ;;  %v566_v19 = vsel %vm534_vm12, %v518_v28, %v550_v31  ;;  %v463_v37 = vmul.f32 %v2266_v10, %v431_v38  ;;  %v471_v43 = vmul.f32 %v2266_v10, %v439_v57  ;;  %v2236_v5 = vld [vmem:[%s2762_s7 + $0x28] sm:$0xff]   ;;  %v2242_v15 = vld [vmem:[%s2762_s7 + $0x10] sm:$0xff]   ;;  %v2245_v12 = vld [vmem:[%s2762_s7 + $0x40] sm:$0xff]  }
  0x91   :  { %v574_v40 = vsel %vm542_vm13, %v526_v29, %v558_v36  ;;  %v206_v22 = vld [vmem:[%s2759_s4] sm:$0x3] }
  0x92   :  { %1346 = vmatpush2.bf16.msra.mxu0 %v2201_v18  ;;  %1387 = vmatpush2.bf16.msra.mxu1 %v2198_v24  ;;  %v582_v42 = vpack.c.bf16 %v574_v40, %v566_v19  ;;  %v520_v45 = vadd.f32 %v2513_v51, %v463_v37  ;;  %v528_v41 = vadd.f32 %v2513_v51, %v471_v43  ;;  %v2230_v51 = vld [vmem:[#allocation2 + $0x384] ss:$8 sps:$4 sm:$0xff]  }
  0x93   :  { %1347 = vmatprep.subr.bf16.mxu0 %v2209_v13  ;;  %1388 = vmatprep.subr.bf16.mxu1 %v2206_v27  ;;  %v2246_v18 = vld [vmem:[%s2762_s7] sm:$0xff]   ;;  %v590_v24 = vrot.slane %v206_v22, %v2516_v56  ;;  %v594_v17 = vrot.slane %v206_v22, %v2485_v34 }
  0x94   :  { %vm536_vm14 = vcmp.gt.f32.partialorder %v520_v45, 0.0  ;;  %vm544_vm15 = vcmp.gt.f32.partialorder %v528_v41, 0.0  ;;  %v552_v46 = vmul.f32 0.1, %v520_v45  ;;  %v560_v49 = vmul.f32 0.1, %v528_v41 }
  0x96   :  { %1348 = vmatpush2.bf16.msra.mxu0 %v2207_v30  ;;  %1389 = vmatpush2.bf16.msra.mxu1 %v2204_v9  ;;  %v568_v54 = vsel %vm536_vm14, %v520_v45, %v552_v46  ;;  %v576_v61 = vsel %vm544_vm15, %v528_v41, %v560_v49 }
  0x97   :  { %1349 = vmatprep.subr.bf16.mxu0 %v2215_v52  ;;  %1390 = vmatprep.subr.bf16.mxu1 %v2212_v33  ;;  %v584_v2 = vpack.c.bf16 %v576_v61, %v568_v54 }
  0x9a   :  { %1350 = vmatpush2.bf16.msra.mxu0 %v2213_v62  ;;  %1391 = vmatpush2.bf16.msra.mxu1 %v2210_v63 }
  0x9b   :  { %1351 = vmatprep.subr.bf16.mxu0 %v2221_v32  ;;  %1392 = vmatprep.subr.bf16.mxu1 %v2218_v44 }
  0x9e   :  { %1352 = vmatpush2.bf16.msra.mxu0 %v2219_v48  ;;  %1393 = vmatpush2.bf16.msra.mxu1 %v2216_v47 }
  0x9f   :  { %1353 = vmatprep.subr.bf16.mxu0 %v2227_v50  ;;  %1394 = vmatprep.subr.bf16.mxu1 %v2224_v59 }
  0xa2   :  { %1354 = vmatpush2.bf16.msra.mxu0 %v2225_v0  ;;  %1395 = vmatpush2.bf16.msra.mxu1 %v2222_v53 }
  0xa3   :  { %1396 = vmatprep.subr.bf16.mxu1 %v2230_v51  ;;  %1994 = vmatprep.subr.bf16.mxu0 %v2231_v58 }
  0xa5   :  { %1356 = vmatmul.mubr.bf16.vlgmr.msra.gmra.mxu0 %v582_v42 }
  0xa6   :  { %1397 = vmatpush2.bf16.msra.mxu1 %v2228_v11  ;;  %1995 = vmatpush3.bf16.msra.mxu0 %v2232_v3 }
  0xa7   :  { %1996 = vmatprep.subr.bf16.mxu0 %v2233_v4 }
  0xa9   :  { %1399 = vmatmul.mubr.bf16.vlgmr.msra.gmra.mxu1 %v584_v2 }
  0xaa   :  { %1997 = vmatpush3.bf16.msra.mxu0 %v2234_v35 }
  0xab   :  { %1998 = vmatprep.subr.bf16.mxu0 %v2235_v1 }
  0xae   :  { %1999 = vmatpush3.bf16.msra.mxu0 %v2236_v5 }
  0xaf   :  { %2000 = vmatprep.subr.bf16.mxu0 %v2237_v6 }
  0xb2   :  { %2001 = vmatpush3.bf16.msra.mxu0 %v2238_v7 }
  0xb3   :  { %2002 = vmatprep.subr.bf16.mxu0 %v2239_v8 }
  0xb6   :  { %2003 = vmatpush3.bf16.msra.mxu0 %v2240_v55 }
  0xb7   :  { %2004 = vmatprep.subr.bf16.mxu0 %v2241_v14 }
  0xba   :  { %2005 = vmatpush3.bf16.msra.mxu0 %v2242_v15 }
  0xbb   :  { %2006 = vmatprep.subr.bf16.mxu0 %v2243_v16 }
  0xbe   :  { %2007 = vmatpush3.bf16.msra.mxu0 %v2244_v39 }
  0xbf   :  { %2008 = vmatprep.subr.bf16.mxu0 %v2245_v12 }
  0xc2   :  { %2009 = vmatpush3.bf16.msra.mxu0 %v2246_v18 }
 0x125   :  { %v1271_v21 = vpop.f32.mrf.mxu0 }
 0x126   :  { %v1272_v26 = vadd.f32 %v1271_v21, %v590_v24 }
 0x127   :  { %v1273_v60 = vpop.f32.mrf.mxu0 }
 0x128   :  { %v1274_v20 = vadd.f32 %v1273_v60, %v594_v17 }
 0x129   :  { %v1314_v23 = vpop.f32.mrf.mxu1  ;;  %v1275_v13 = vpop.f32.mrf.mxu0 }
 0x12a   :  { %v1276_v29 = vadd.f32 %v1275_v13, %v590_v24  ;;  %v1315_v31 = vadd.f32 %v1314_v23, %v1272_v26 }
 0x12b   :  { %v1316_v25 = vpop.f32.mrf.mxu1  ;;  %v1277_v27 = vpop.f32.mrf.mxu0 }
 0x12c   :  { %v1278_v36 = vadd.f32 %v1277_v27, %v594_v17  ;;  %v1317_v52 = vadd.f32 %v1316_v25, %v1274_v20 }
 0x12d   :  { %v1318_v28 = vpop.f32.mrf.mxu1 }
 0x12e   :  { %v1319_v57 = vadd.f32 %v1318_v28, %v1276_v29 }
 0x12f   :  { %v1320_v38 = vpop.f32.mrf.mxu1 }
 0x130   :  { %v1321_v10 = vadd.f32 %v1320_v38, %v1278_v36  ;;  %v1409_v36 = vld [vmem:[%s2760_s5] sm:$0x3] }
 0x131   :  { %v1492_v38 = vrot.slane %v1409_v36, %v2516_v56 }
 0x165   :  { %v1357_v30 = vpop.f32.mrf.mxu0 }
 0x166   :  { %v1358_v33 = vadd.f32 %v1357_v30, %v1315_v31 }
 0x167   :  { %v1359_v9 = vpop.f32.mrf.mxu0 }
 0x168   :  { %v1360_v42 = vadd.f32 %v1359_v9, %v1317_v52 }
 0x169   :  { %v1361_v19 = vpop.f32.mrf.mxu0  ;;  %v1400_v40 = vpop.f32.mrf.mxu1 }
 0x16a   :  { %v1362_v62 = vadd.f32 %v1361_v19, %v1319_v57  ;;  %v1401_v37 = vadd.f32 %v1400_v40, %v1358_v33  ;;  %v1410_v57 = vld [vmem:[%s2761_s6] sm:$0x3]  ;;  %v1496_v40 = vrot.slane %v1409_v36, %v2485_v34 }
 0x16b   :  { %v1363_v63 = vpop.f32.mrf.mxu0  ;;  %v1402_v32 = vpop.f32.mrf.mxu1 }
 0x16c   :  { %v1364_v43 = vadd.f32 %v1363_v63, %v1321_v10  ;;  %v2704_v44 = vadd.f32 %v1402_v32, %v1360_v42  ;;  %v1460_v48 = vmul.f32 %v1401_v37, %v1401_v37 }
 0x16d   :  { %v1404_v45 = vpop.f32.mrf.mxu1 }
 0x16e   :  { %v1405_v41 = vadd.f32 %v1404_v45, %v1362_v62  ;;  %v1461_v59 = vmul.f32 %v2704_v44, %v2704_v44  ;;  %v1515_v62 = vrot.slane %v1410_v57, %v2516_v56 }
 0x16f   :  { %v1406_v47 = vpop.f32.mrf.mxu1 }
 0x170   :  { %v1444_v50 = vadd.f32 %v1405_v41, %v1401_v37  ;;  %v1462_v46 = vmul.f32 %v1405_v41, %v1405_v41  ;;  %v1407_v49 = vadd.f32 %v1406_v47, %v1364_v43 }
 0x172   :  { %v1445_v54 = vrot.slane %v1444_v50, 4  ;;  %v1464_v61 = vadd.f32 %v1462_v46, %v1460_v48  ;;  %v1451_v0 = vadd.f32 %v1407_v49, %v2704_v44  ;;  %v1463_v2 = vmul.f32 %v1407_v49, %v1407_v49 }
 0x174   :  { %v1446_v53 = vadd.f32 %v1445_v54, %v1444_v50  ;;  %v1465_v51 = vrot.slane %v1464_v61, 4  ;;  %v1452_v11 = vrot.slane %v1451_v0, 4  ;;  %v1471_v58 = vadd.f32 %v1463_v2, %v1461_v59 }
 0x176   :  { %v1447_v3 = vrot.slane %v1446_v53, 2  ;;  %v1466_v4 = vadd.f32 %v1465_v51, %v1464_v61  ;;  %v1453_v35 = vadd.f32 %v1452_v11, %v1451_v0  ;;  %v1472_v1 = vrot.slane %v1471_v58, 4 }
 0x178   :  { %v1448_v5 = vadd.f32 %v1447_v3, %v1446_v53  ;;  %v1467_v6 = vrot.slane %v1466_v4, 2  ;;  %v1454_v7 = vrot.slane %v1453_v35, 2  ;;  %v1473_v8 = vadd.f32 %v1472_v1, %v1471_v58  ;;  %v2247_v3 = vld [vmem:[%s2766_s11 + $0x18] sm:$0xff]   ;;  %v2249_v1 = vld [vmem:[%s2766_s11 + $0x8] sm:$0xff]  }
 0x17a   :  { %v1449_v55 = vrot.slane %v1448_v5, 1  ;;  %v1468_v14 = vadd.f32 %v1467_v6, %v1466_v4  ;;  %v1455_v15 = vadd.f32 %v1454_v7, %v1453_v35  ;;  %v1474_v16 = vrot.slane %v1473_v8, 2  ;;  %v2248_v35 = vld [vmem:[%s2766_s11 + $0x10] sm:$0xff]   ;;  %v1969_v7 = vld [vmem:[%s2763_s8] ss:$0 sm:$0xff] }
 0x17b   :  { %v2320_v4 = vmov 0.0  }
 0x17c   :  { %v1450_v39 = vadd.f32 %v1449_v55, %v1448_v5  ;;  %v1469_v12 = vrot.slane %v1468_v14, 1  ;;  %v1456_v18 = vrot.slane %v1455_v15, 1  ;;  %v1475_v21 = vadd.f32 %v1474_v16, %v1473_v8  ;;  %2021 = vmatprep.subr.bf16.mxu1 %v2320_v4  ;;  %2029 = vmatprep.mubr.msk.bf16.mxu1 %vm2321_vm4, %v2320_v4  ;;  %v2250_v5 = vld [vmem:[%s2766_s11] sm:$0xff]  }
 0x17d   :  { %2022 = vmatpush3.bf16.msra.mxu1 %v2247_v3 }
 0x17e   :  { %v1458_v60 = vmul.f32 0.0625, %v1450_v39  ;;  %v1470_v22 = vadd.f32 %v1469_v12, %v1468_v14  ;;  %v1457_v23 = vadd.f32 %v1456_v18, %v1455_v15  ;;  %v1476_v24 = vrot.slane %v1475_v21, 1  ;;  %2023 = vmatprep.subr.bf16.mxu1 %v2320_v4 }
 0x180   :  { %v1478_v13 = vmul.f32 0.0625, %v1470_v22  ;;  %v1480_v17 = vmul.f32 %v1458_v60, %v1458_v60  ;;  %v1459_v25 = vmul.f32 0.0625, %v1457_v23  ;;  %v1477_v26 = vadd.f32 %v1476_v24, %v1475_v21 }
 0x181   :  { %v1484_v9 = vsub.f32 %v1401_v37, %v1458_v60  ;;  %v1486_v52 = vsub.f32 %v1405_v41, %v1458_v60  ;;  %v1519_v41 = vrot.slane %v1410_v57, %v2485_v34  ;;  %2024 = vmatpush3.bf16.msra.mxu1 %v2248_v35 }
 0x182   :  { %v1482_v27 = vsub.f32 %v1478_v13, %v1480_v17  ;;  %v1479_v20 = vmul.f32 0.0625, %v1477_v26  ;;  %v1481_v28 = vmul.f32 %v1459_v25, %v1459_v25  ;;  %v1485_v33 = vsub.f32 %v2704_v44, %v1459_v25  ;;  %2025 = vmatprep.subr.bf16.mxu1 %v2320_v4 }
 0x183   :  { %v1487_v19 = vsub.f32 %v1407_v49, %v1459_v25  ;;  %v1499_v42 = vmul.f32 %v1492_v38, %v1484_v9  ;;  %v1501_v10 = vmul.f32 %v1492_v38, %v1486_v52 }
 0x184   :  { %v1503_v29 = vadd.f32 1e-05, %v1482_v27  ;;  %v1483_v30 = vsub.f32 %v1479_v20, %v1481_v28  ;;  %v1500_v37 = vmul.f32 %v1496_v40, %v1485_v33 }
 0x185   :  { %v1502_v45 = vmul.f32 %v1496_v40, %v1487_v19  ;;  %2026 = vmatpush3.bf16.msra.mxu1 %v2249_v1 }
 0x186   :  { %2267 = vrsqrt.f32 %v1503_v29  ;;  %v1504_v31 = vadd.f32 1e-05, %v1483_v30  ;;  %2027 = vmatprep.subr.bf16.mxu1 %v2320_v4 }
 0x188   :  { %2269 = vrsqrt.f32 %v1504_v31 }
 0x189   :  { %2028 = vmatpush3.bf16.msra.mxu1 %v2250_v5 }
 0x193   :  { %v2268_v63 = vpop.eup %2267 }
 0x194   :  { %v1507_v32 = vmul.f32 %v2268_v63, %v1499_v42  ;;  %v1509_v43 = vmul.f32 %v2268_v63, %v1501_v10  ;;  %v1986_v63 = vld [vmem:[%s2764_s9] ss:$0 sm:$0xff] }
 0x195   :  { %v2270_v47 = vpop.eup %2269 }
 0x196   :  { %v1524_v48 = vadd.f32 %v1515_v62, %v1509_v43  ;;  %v1522_v50 = vadd.f32 %v1515_v62, %v1507_v32  ;;  %v1510_v46 = vmul.f32 %v2270_v47, %v1502_v45  ;;  %v1508_v59 = vmul.f32 %v2270_v47, %v1500_v37  ;;  %v1987_v45 = vld [vmem:[%s2765_s10] ss:$0 sm:$0xff]  ;;  %s2322_s10 = smov [#allocation5]  }
 0x197   :  { %s1829_s22 = sshll.u32 %s2322_s10, 4  ;;  %s1830_s22 = int_to_ptr.vmem [resolvable:$true] %s1829_s22 }
 0x198   :  { %v1530_v44 = vmul.f32 0.1, %v1522_v50  ;;  %v1532_v49 = vmul.f32 0.1, %v1524_v48  ;;  %v1523_v54 = vadd.f32 %v1519_v41, %v1508_v59  ;;  %v1525_v61 = vadd.f32 %v1519_v41, %v1510_v46  ;;  %s2293_s23 = scalar_lea.vmem %s1830_s22, 256  ;;  %p2298_p6 = scmp.lt.s32.totalorder %s1830_s22, %s1830_s22 }
 0x199   :  { %vm1526_vm0 = vcmp.gt.f32.partialorder %v1522_v50, 0.0  ;;  %vm1528_vm1 = vcmp.gt.f32.partialorder %v1524_v48, 0.0  ;;  %p2294_p5 = scmp.ne.s32.totalorder %s1830_s22, %s2293_s23  ;;  %p2299_p7 = scmp.lt.s32.totalorder %s2293_s23, %s2293_s23 }
 0x19a   :  { %vm1527_vm2 = vcmp.gt.f32.partialorder %v1523_v54, 0.0  ;;  %vm1529_vm3 = vcmp.gt.f32.partialorder %v1525_v61, 0.0  ;;  %v1531_v56 = vmul.f32 0.1, %v1523_v54  ;;  %v1533_v0 = vmul.f32 0.1, %v1525_v61 }
 0x19b   :  { %v1534_v2 = vsel %vm1526_vm0, %v1522_v50, %v1530_v44  ;;  %v1536_v53 = vsel %vm1528_vm1, %v1524_v48, %v1532_v49  ;;  %p2300_p8 = por %p2299_p7, %p2298_p6 }
 0x19c   :  { %v1535_v51 = vsel %vm1527_vm2, %v1523_v54, %v1531_v56  ;;  %v1537_v11 = vsel %vm1529_vm3, %v1525_v61, %v1533_v0  ;;  %v1538_v58 = vpack.c.bf16 %v1536_v53, %v1534_v2  ;;  %v1988_v61 = vld [vmem:[%s2767_s12] ss:$0 sm:$0xff] }
 0x19d   :  { %v1539_v34 = vpack.c.bf16 %v1537_v11, %v1535_v51  ;;  %p2301_p9 = pnand %p2300_p8, %p2294_p5 }
 0x19f   :  { %1674 = vmatprep.mubr.bf16.mxu0 %v1539_v34 }
 0x1a0   :  { %1675 = vmatmul.mubr.bf16.vlgmr.msra.gmra.mxu0 %v1538_v58 }
 0x260   :  { %v2010_v6 = vpop.f32.mrf.mxu0 }
 0x262   :  { %v2011_v8 = vpop.f32.mrf.mxu0 }
 0x263   :  { %v2012_v55 = vadd.f32 %v2011_v8, %v2010_v6 }
 0x264   :  { %v2013_v14 = vpop.f32.mrf.mxu0 }
 0x265   :  { %v1677_v15 = vadd.f32 %v2012_v55, %v1969_v7 }
 0x266   :  { %v2014_v16 = vpop.f32.mrf.mxu0 }
 0x267   :  { %v2015_v39 = vadd.f32 %v2014_v16, %v2013_v14  ;;  %v1705_v12 = vmul.f32 %v1677_v15, %v1677_v15  ;;  %v1695_v60 = vsel %vm1694_vm5, %v1677_v15, 0.0 }
 0x269   :  { %v1680_v18 = vadd.f32 %v2015_v39, %v1969_v7  ;;  %v1707_v24 = vsel %vm1694_vm5, %v1705_v12, 0.0 }
 0x26b   :  { %v1706_v21 = vmul.f32 %v1680_v18, %v1680_v18  ;;  %v1696_v22 = vsel %vm1694_vm5, %v1680_v18, 0.0 }
 0x26c   :  { %v1697_v23 = vadd.f32 %v1696_v22, %v1695_v60 }
 0x26d   :  { %v1708_v13 = vsel %vm1694_vm5, %v1706_v21, 0.0 }
 0x26e   :  { %v1698_v17 = vrot.slane %v1697_v23, 4  ;;  %v1709_v25 = vadd.f32 %v1708_v13, %v1707_v24 }
 0x270   :  { %v1699_v26 = vadd.f32 %v1698_v17, %v1697_v23  ;;  %v1710_v27 = vrot.slane %v1709_v25, 4 }
 0x272   :  { %v1700_v20 = vrot.slane %v1699_v26, 2  ;;  %v1711_v28 = vadd.f32 %v1710_v27, %v1709_v25 }
 0x274   :  { %v1701_v29 = vadd.f32 %v1700_v20, %v1699_v26  ;;  %v1712_v30 = vrot.slane %v1711_v28, 2 }
 0x276   :  { %v1702_v31 = vrot.slane %v1701_v29, 1  ;;  %v1713_v36 = vadd.f32 %v1712_v30, %v1711_v28 }
 0x278   :  { %v1703_v9 = vadd.f32 %v1702_v31, %v1701_v29  ;;  %v1714_v52 = vrot.slane %v1713_v36, 1 }
 0x27a   :  { %v1704_v38 = vmul.f32 0.0625, %v1703_v9  ;;  %v1715_v57 = vadd.f32 %v1714_v52, %v1713_v36 }
 0x27c   :  { %v1716_v33 = vmul.f32 0.0625, %v1715_v57  ;;  %v1717_v19 = vmul.f32 %v1704_v38, %v1704_v38  ;;  %v1719_v10 = vsub.f32 %v1677_v15, %v1704_v38  ;;  %v1720_v62 = vsub.f32 %v1680_v18, %v1704_v38 }
 0x27e   :  { %v1718_v40 = vsub.f32 %v1716_v33, %v1717_v19  ;;  %v1727_v32 = vmul.f32 %v1986_v63, %v1719_v10  ;;  %v1728_v43 = vmul.f32 %v1986_v63, %v1720_v62 }
 0x280   :  { %v1729_v42 = vadd.f32 1e-05, %v1718_v40 }
 0x282   :  { %2271 = vrsqrt.f32 %v1729_v42 }
 0x28f   :  { %v2272_v37 = vpop.eup %2271 }
 0x290   :  { %v1731_v41 = vmul.f32 %v2272_v37, %v1727_v32  ;;  %v1732_v47 = vmul.f32 %v2272_v37, %v1728_v43 }
 0x292   :  { %v1739_v48 = vadd.f32 %v1987_v45, %v1731_v41  ;;  %v1740_v50 = vadd.f32 %v1987_v45, %v1732_v47 }
 0x294   :  { %vm1741_vm6 = vcmp.gt.f32.partialorder %v1739_v48, 0.0  ;;  %vm1742_vm7 = vcmp.gt.f32.partialorder %v1740_v50, 0.0  ;;  %v1743_v46 = vmul.f32 0.1, %v1739_v48  ;;  %v1744_v59 = vmul.f32 0.1, %v1740_v50 }
 0x296   :  { %v1745_v44 = vsel %vm1741_vm6, %v1739_v48, %v1743_v46  ;;  %v1746_v49 = vsel %vm1742_vm7, %v1740_v50, %v1744_v59 }
 0x297   :  { %v1747_v54 = vpack.c.bf16 %v1746_v49, %v1745_v44 }
 0x299   :  { %2030 = vmatmul.mubr.msk.bf16.vlgmr.msra.gmra.mxu1 %vm1694_vm5, %v1747_v54 }
 0x359   :  { %v1815_v56 = vpop.f32.mrf.mxu1 }
 0x35a   :  { %v1816_v0 = vadd.f32 %v1988_v61, %v1815_v56 }
 0x35b   :  { %v2031_v2 = vpop.f32.mrf.mxu1 }
 0x35c   :  { %1822 = vst [vmem:[#allocation5] sm:$0xff] %v1816_v0 }
 0x35d   :  { %v1818_v53 = vpop.f32.mrf.mxu1 }
 0x35e   :  { %v1819_v51 = vadd.f32 %v1988_v61, %v1818_v53 }
 0x35f   :  { %v2032_v11 = vpop.f32.mrf.mxu1 }
 0x360   :  { %1823 = vst [vmem:[#allocation5 + $0x8] sm:$0xff] %v1819_v51 }
 0x361   :  { %2304 = shalt.err (!%p2301_p9)
}
 0x362   :  { %1835 = dma.vmem_to_hbm [thread:$0]  %s1830_s22, 256, %s2768_s13, [#allocation4], %s2318_s28, %s2318_s28, %s2319_s29  }
 0x363   :  { %2315 = dma.done.wait [#allocation4], 256  }
 0x364   :  { %2316 = vsyncadd [#allocation4], 4294967040 }
 0x365   :  { %1839 = vsyncpa [#allocation3], 1 }
 0x366   :  { %1840 = vsyncpa [#allocation4], 1 }

</bundles_post_ra>
